<compile_context>
chip_gen: v7x
topology: tpu7x:2x2x1
jax: 0.10.0
libtpu: 0.0.40
codegen_flags: <defaults>
</compile_context>

<pallas_src>
import functools

import jax
import jax.numpy as jnp
from jax.experimental import pallas as pl
from jax.experimental.pallas import tpu as pltpu


# -----------------------------------------------------------------------------
# Kernel helpers
# -----------------------------------------------------------------------------
def _zero_halo(pad_ref, Hh, Wh):
    """Zero only the 1-pixel halo strips of a (Nb, Hh+2, Wh+2, C) scratch.

    The (Hh, Wh) interior is fully overwritten every grid step, so re-zeroing
    the whole buffer would be wasted vst traffic.
    """
    Nb, _, _, C = pad_ref.shape
    zrow = jnp.zeros((Nb, 1, Wh + 2, C), jnp.float32)
    pad_ref[:, 0:1, :, :] = zrow
    pad_ref[:, Hh + 1:Hh + 2, :, :] = zrow
    zcol = jnp.zeros((Nb, Hh + 2, 1, C), jnp.float32)
    pad_ref[:, :, 0:1, :] = zcol
    pad_ref[:, :, Wh + 1:Wh + 2, :] = zcol


def _conv3x3_bn_relu(pad_ref, w_ref, s_ref, M, Hh, Wh):
    """3x3 conv (pad already materialized) + fused BN shift + ReLU.

    Hybrid im2col: concatenate only the 3 dx shifts (K = 3*C) and accumulate
    3 MXU dots over dy. This cuts the lane-repacking (concat) work ~3x vs a
    single 9*C panel, trading it for 2 extra MXU pushes on an idle slot.
      pad_ref : (Nb, Hh+2, Wh+2, C)
      w_ref   : (3, 3*C, Co)  -- dy-major folded weights
      s_ref   : (1, Co)       -- fused conv-bias + BN shift
    Returns (M, Co) float32 with M = Nb*Hh*Wh.
    """
    C = pad_ref.shape[-1]
    acc = None
    for dy in range(3):
        panel = jnp.concatenate(
            [pad_ref[:, dy:dy + Hh, dx:dx + Wh, :] for dx in range(3)],
            axis=-1).reshape(M, 3 * C)
        part = jnp.dot(panel, w_ref[dy], preferred_element_type=jnp.float32)
        acc = part if acc is None else acc + part
    return jnp.maximum(acc + s_ref[...], 0.0)


# -----------------------------------------------------------------------------
# Fused kernel: one grid step processes Nb batch elements.
#   x_ref  : (Nb, Hh, 2, Wh, 2, Cin)  pooling windows exposed as explicit dims
#   w1_ref : (3, 3*Cin,  Cmid)        conv1 weights with BN scale folded in
#   s1_ref : (1, Cmid)                conv1 bias + BN shift (fused)
#   w2_ref : (3, 3*Cmid, Cout_pad)    conv2 weights, out-channels padded to 128
#   s2_ref : (1, Cout_pad)            conv2 bias + BN shift (fused, padded)
#   o_ref  : (Nb, Hh*Wh, Cout_pad)    lane-dense output block
#   pad1_ref, pad2_ref : VMEM scratch for in-kernel zero padding
# -----------------------------------------------------------------------------
def _down_fused_kernel(x_ref, w1_ref, s1_ref, w2_ref, s2_ref, o_ref,
                       pad1_ref, pad2_ref, *, Nb, Hh, Wh):
    Cmid = pad2_ref.shape[-1]
    M = Nb * Hh * Wh

    # ---- 2x2 max pool, stride 2 (pure VPU) ---------------------------------
    # Upcast before the elementwise max: v5e's VPU has no native bf16.
    x = x_ref[...].astype(jnp.float32)                   # (Nb, Hh, 2, Wh, 2, Cin)
    xp = jnp.maximum(
        jnp.maximum(x[:, :, 0, :, 0, :], x[:, :, 0, :, 1, :]),
        jnp.maximum(x[:, :, 1, :, 0, :], x[:, :, 1, :, 1, :]))  # (Nb, Hh, Wh, Cin)

    # ---- conv1 (3x3, pad 1) + BN + ReLU ------------------------------------
    _zero_halo(pad1_ref, Hh, Wh)
    pad1_ref[:, 1:Hh + 1, 1:Wh + 1, :] = xp
    y1 = _conv3x3_bn_relu(pad1_ref, w1_ref, s1_ref, M, Hh, Wh)   # (M, Cmid)

    # ---- conv2 (3x3, pad 1) + BN + ReLU ------------------------------------
    _zero_halo(pad2_ref, Hh, Wh)
    pad2_ref[:, 1:Hh + 1, 1:Wh + 1, :] = y1.reshape(Nb, Hh, Wh, Cmid)
    y2 = _conv3x3_bn_relu(pad2_ref, w2_ref, s2_ref, M, Hh, Wh)   # (M, Cout_pad)

    # Lane-dense store: last dim is a multiple of 128 -> unmasked vst.
    o_ref[...] = y2.reshape(Nb, Hh * Wh, -1).astype(o_ref.dtype)


# -----------------------------------------------------------------------------
# Wrapper-side algebra: fold BN(eval) into conv weights/bias.
#   y = BN(conv(x)) = x @ (W * scale) + (b - mean) * scale + beta
# -----------------------------------------------------------------------------
def _fold_conv_bn(w, b, gamma, beta, mean, var, eps=1e-5, out_pad=None):
    """w: (3, 3, Cin, Cout) HWIO -> ((3, 3*Cin, Cp) folded weight, (1, Cp) shift).

    If out_pad > Cout the output channels are zero-padded to Cp = out_pad so
    the kernel's final store is lane-dense (padded lanes stay 0 after ReLU).
    """
    cin, cout = w.shape[2], w.shape[3]
    inv_std = 1.0 / jnp.sqrt(var.astype(jnp.float32) + eps)
    scale = gamma.astype(jnp.float32) * inv_std                       # (Cout,)
    w_f = (w.astype(jnp.float32) * scale).reshape(9 * cin, cout)      # (9*Cin, Cout)
    shift = ((b.astype(jnp.float32) - mean.astype(jnp.float32)) * scale
             + beta.astype(jnp.float32)).reshape(1, cout)             # (1, Cout)
    if out_pad is not None and out_pad > cout:
        w_f = jnp.pad(w_f, ((0, 0), (0, out_pad - cout)))
        shift = jnp.pad(shift, ((0, 0), (0, out_pad - cout)))
    cp = w_f.shape[-1]
    return w_f.reshape(3, 3 * cin, cp), shift


def _pick_nb(n):
    """Images per grid step: amortize the ~0.35us step overhead and fatten the
    MXU M dim, while keeping grid length >= 2 so both v7x TCs get work."""
    for nb in (8, 4, 2):
        if n % nb == 0 and n // nb >= 2:
            return nb
    return 1


# -----------------------------------------------------------------------------
# `Down.forward` equivalent (NCHW in / NCHW out).
#   p = (w_hwio, b, gamma, beta, running_mean, running_var)
#   act_dtype=jnp.bfloat16 halves the input DMA bytes (recommended on v6e/v7x);
#   matmul accumulation and the epilogue stay in f32 either way.
# -----------------------------------------------------------------------------
def down_forward(x_nchw, p1, p2, eps=1e-5, act_dtype=jnp.float32):
    N, Cin, H, W = x_nchw.shape
    assert H % 2 == 0 and W % 2 == 0, "MaxPool2d(2) requires even H and W"
    Hh, Wh = H // 2, W // 2
    Cmid = p1[0].shape[-1]
    Cout = p2[0].shape[-1]
    Cout_pad = -(-Cout // 128) * 128          # pad out channels -> lane-dense store

    w1, s1 = _fold_conv_bn(*p1, eps=eps)
    w2, s2 = _fold_conv_bn(*p2, eps=eps, out_pad=Cout_pad)

    Nb = _pick_nb(N)

    # NCHW -> NHWC, then expose the 2x2 pooling windows (the reshape is a free
    # view; only the transposes cost HBM traffic).
    # TODO(synk): the NCHW<->NHWC transposes are call-site glue; accept/produce
    #             NHWC end-to-end to drop two full-tensor HBM round trips.
    x = jnp.transpose(x_nchw, (0, 2, 3, 1)).astype(act_dtype)
    x = x.reshape(N, Hh, 2, Wh, 2, Cin)

    kern = functools.partial(_down_fused_kernel, Nb=Nb, Hh=Hh, Wh=Wh)
    out = pl.pallas_call(
        kern,
        out_shape=jax.ShapeDtypeStruct((N, Hh * Wh, Cout_pad), jnp.float32),
        grid=(N // Nb,),
        in_specs=[
            pl.BlockSpec((Nb, Hh, 2, Wh, 2, Cin), lambda n: (n, 0, 0, 0, 0, 0)),
            pl.BlockSpec((3, 3 * Cin, Cmid), lambda n: (0, 0, 0)),
            pl.BlockSpec((1, Cmid), lambda n: (0, 0)),
            pl.BlockSpec((3, 3 * Cmid, Cout_pad), lambda n: (0, 0, 0)),
            pl.BlockSpec((1, Cout_pad), lambda n: (0, 0)),
        ],
        out_specs=pl.BlockSpec((Nb, Hh * Wh, Cout_pad), lambda n: (n, 0, 0)),
        scratch_shapes=[
            pltpu.VMEM((Nb, Hh + 2, Wh + 2, Cin), jnp.float32),   # conv1 padded in
            pltpu.VMEM((Nb, Hh + 2, Wh + 2, Cmid), jnp.float32),  # conv2 padded in
        ],
        compiler_params=pltpu.CompilerParams(
            dimension_semantics=("parallel",)),   # megacore: both TCs get work
    )(x, w1, s1, w2, s2)

    out = out[:, :, :Cout].reshape(N, Hh, Wh, Cout)
    return jnp.transpose(out, (0, 3, 1, 2))       # NHWC -> NCHW (glue)


# -----------------------------------------------------------------------------
# Pure-JAX reference (same eval-mode BN semantics) for validation.
# -----------------------------------------------------------------------------
def _ref_conv_bn_relu(x, w, b, gamma, beta, mean, var, eps=1e-5):
    y = jax.lax.conv_general_dilated(
        x, w, window_strides=(1, 1), padding=[(1, 1), (1, 1)],
        dimension_numbers=('NHWC', 'HWIO', 'NHWC'))
    y = y + b
    y = (y - mean) / jnp.sqrt(var + eps) * gamma + beta
    return jnp.maximum(y, 0.0)


def _ref_down(x_nchw, p1, p2):
    x = jnp.transpose(x_nchw, (0, 2, 3, 1))
    N, H, W, C = x.shape
    x = jnp.max(x.reshape(N, H // 2, 2, W // 2, 2, C), axis=(2, 4))
    x = _ref_conv_bn_relu(x, *p1)
    x = _ref_conv_bn_relu(x, *p2)
    return jnp.transpose(x, (0, 3, 1, 2))


if __name__ == "__main__":
    key = jax.random.PRNGKey(0)
    N, Cin, H, W = 2, 4, 16, 16
    Cout = 8

    ks = jax.random.split(key, 5)
    x = jax.random.normal(ks[0], (N, Cin, H, W), jnp.float32)

    def make_conv_params(kw, kb, cin, cout):
        # PyTorch-Conv2d-style uniform init: U(-1/sqrt(fan_in), +1/sqrt(fan_in))
        fan_in = cin * 3 * 3
        bound = 1.0 / (fan_in ** 0.5)
        w = jax.random.uniform(kw, (3, 3, cin, cout), jnp.float32, -bound, bound)
        b = jax.random.uniform(kb, (cout,), jnp.float32, -bound, bound)
        # BatchNorm2d at init: gamma=1, beta=0, running_mean=0, running_var=1
        gamma = jnp.ones((cout,), jnp.float32)
        beta = jnp.zeros((cout,), jnp.float32)
        rmean = jnp.zeros((cout,), jnp.float32)
        rvar = jnp.ones((cout,), jnp.float32)
        return (w, b, gamma, beta, rmean, rvar)

    p1 = make_conv_params(ks[1], ks[2], Cin, Cout)
    p2 = make_conv_params(ks[3], ks[4], Cout, Cout)

    ref = _ref_down(x, p1, p2)

    # f32 activations: matches the PyTorch module's numerics (eval-mode BN).
    out = jax.block_until_ready(down_forward(x, p1, p2))
    assert out.shape == (N, Cout, H // 2, W // 2), out.shape
    err = float(jnp.max(jnp.abs(out - ref)))
    assert jnp.allclose(out, ref, atol=1e-4, rtol=1e-4), err

    # bf16 activations (halves input DMA bytes; recommended on v6e/v7x).
    # Loose-tolerance sanity check only: bf16 carries ~3 significant digits.
    out_bf16 = jax.block_until_ready(
        down_forward(x, p1, p2, act_dtype=jnp.bfloat16))
    err_bf16 = float(jnp.max(jnp.abs(out_bf16 - ref)))
    assert jnp.allclose(out_bf16, ref, atol=1e-1, rtol=1e-1), err_bf16

    print("KERNEL_OK")
</pallas_src>

<mosaic_0001>
module attributes {stable_mosaic.version = 11 : i64} {
  func.func @_down_fused_kernel(%arg0: i32, %arg1: memref<1x8x2x8x2x4xf32, #tpu.memory_space<vmem>>, %arg2: memref<3x12x8xf32, #tpu.memory_space<vmem>>, %arg3: memref<1x8xf32, #tpu.memory_space<vmem>>, %arg4: memref<3x24x128xf32, #tpu.memory_space<vmem>>, %arg5: memref<1x128xf32, #tpu.memory_space<vmem>>, %arg6: memref<1x64x128xf32, #tpu.memory_space<vmem>>, %arg7: memref<1x10x10x4xf32, #tpu.memory_space<vmem>>, %arg8: memref<1x10x10x8xf32, #tpu.memory_space<vmem>>) attributes {dimension_semantics = [#tpu.dimension_semantics<parallel>], iteration_bounds = array<i64: 2>, scalar_prefetch = 0 : i64, scratch_operands = 2 : i64, tpu.core_type = #tpu.core_type<tc>, window_params = [{transform_indices = @transform_0, window_bounds = array<i64: 1, 8, 2, 8, 2, 4>}, {pipeline_mode = #tpu.pipeline_mode<synchronous>, transform_indices = @transform_1, window_bounds = array<i64: 3, 12, 8>}, {pipeline_mode = #tpu.pipeline_mode<synchronous>, transform_indices = @transform_2, window_bounds = array<i64: 1, 8>}, {pipeline_mode = #tpu.pipeline_mode<synchronous>, transform_indices = @transform_3, window_bounds = array<i64: 3, 24, 128>}, {pipeline_mode = #tpu.pipeline_mode<synchronous>, transform_indices = @transform_4, window_bounds = array<i64: 1, 128>}, {transform_indices = @transform_5, window_bounds = array<i64: 1, 64, 128>}]} {
    %c0 = arith.constant 0 : index
    %c0_0 = arith.constant 0 : index
    %c0_1 = arith.constant 0 : index
    %c0_2 = arith.constant 0 : index
    %c0_3 = arith.constant 0 : index
    %c0_4 = arith.constant 0 : index
    %0 = vector.load %arg1[%c0, %c0_0, %c0_1, %c0_2, %c0_3, %c0_4] : memref<1x8x2x8x2x4xf32, #tpu.memory_space<vmem>>, vector<1x8x2x8x2x4xf32>
    %1 = vector.extract_strided_slice %0 {offsets = [0, 0, 0, 0, 0, 0], sizes = [1, 8, 1, 8, 1, 4], strides = [1, 1, 1, 1, 1, 1]} : vector<1x8x2x8x2x4xf32> to vector<1x8x1x8x1x4xf32>
    %2 = vector.shape_cast %1 : vector<1x8x1x8x1x4xf32> to vector<1x8x8x4xf32>
    %3 = vector.extract_strided_slice %0 {offsets = [0, 0, 0, 0, 1, 0], sizes = [1, 8, 1, 8, 1, 4], strides = [1, 1, 1, 1, 1, 1]} : vector<1x8x2x8x2x4xf32> to vector<1x8x1x8x1x4xf32>
    %4 = vector.shape_cast %3 : vector<1x8x1x8x1x4xf32> to vector<1x8x8x4xf32>
    %5 = arith.maximumf %2, %4 : vector<1x8x8x4xf32>
    %6 = vector.extract_strided_slice %0 {offsets = [0, 0, 1, 0, 0, 0], sizes = [1, 8, 1, 8, 1, 4], strides = [1, 1, 1, 1, 1, 1]} : vector<1x8x2x8x2x4xf32> to vector<1x8x1x8x1x4xf32>
    %7 = vector.shape_cast %6 : vector<1x8x1x8x1x4xf32> to vector<1x8x8x4xf32>
    %8 = vector.extract_strided_slice %0 {offsets = [0, 0, 1, 0, 1, 0], sizes = [1, 8, 1, 8, 1, 4], strides = [1, 1, 1, 1, 1, 1]} : vector<1x8x2x8x2x4xf32> to vector<1x8x1x8x1x4xf32>
    %9 = vector.shape_cast %8 : vector<1x8x1x8x1x4xf32> to vector<1x8x8x4xf32>
    %10 = arith.maximumf %7, %9 : vector<1x8x8x4xf32>
    %11 = arith.maximumf %5, %10 : vector<1x8x8x4xf32>
    %cst = arith.constant 0.000000e+00 : f32
    %12 = vector.broadcast %cst : f32 to vector<1x1x10x4xf32>
    %c0_5 = arith.constant 0 : index
    %c0_6 = arith.constant 0 : index
    %c0_7 = arith.constant 0 : index
    %c0_8 = arith.constant 0 : index
    %13 = vector.load %arg7[%c0_5, %c0_6, %c0_7, %c0_8] : memref<1x10x10x4xf32, #tpu.memory_space<vmem>>, vector<1x1x10x4xf32>
    tpu.vector_store %arg7[%c0_5, %c0_6, %c0_7, %c0_8], %12 {strides = array<i32>} : memref<1x10x10x4xf32, #tpu.memory_space<vmem>>, vector<1x1x10x4xf32>,
    %c0_9 = arith.constant 0 : index
    %c9 = arith.constant 9 : index
    %c0_10 = arith.constant 0 : index
    %c0_11 = arith.constant 0 : index
    %14 = vector.load %arg7[%c0_9, %c9, %c0_10, %c0_11] : memref<1x10x10x4xf32, #tpu.memory_space<vmem>>, vector<1x1x10x4xf32>
    tpu.vector_store %arg7[%c0_9, %c9, %c0_10, %c0_11], %12 {strides = array<i32>} : memref<1x10x10x4xf32, #tpu.memory_space<vmem>>, vector<1x1x10x4xf32>,
    %cst_12 = arith.constant 0.000000e+00 : f32
    %15 = vector.broadcast %cst_12 : f32 to vector<1x10x1x4xf32>
    %c0_13 = arith.constant 0 : index
    %c0_14 = arith.constant 0 : index
    %c0_15 = arith.constant 0 : index
    %c0_16 = arith.constant 0 : index
    %16 = vector.load %arg7[%c0_13, %c0_14, %c0_15, %c0_16] : memref<1x10x10x4xf32, #tpu.memory_space<vmem>>, vector<1x10x1x4xf32>
    tpu.vector_store %arg7[%c0_13, %c0_14, %c0_15, %c0_16], %15 {strides = array<i32>} : memref<1x10x10x4xf32, #tpu.memory_space<vmem>>, vector<1x10x1x4xf32>,
    %c0_17 = arith.constant 0 : index
    %c0_18 = arith.constant 0 : index
    %c9_19 = arith.constant 9 : index
    %c0_20 = arith.constant 0 : index
    %17 = vector.load %arg7[%c0_17, %c0_18, %c9_19, %c0_20] : memref<1x10x10x4xf32, #tpu.memory_space<vmem>>, vector<1x10x1x4xf32>
    tpu.vector_store %arg7[%c0_17, %c0_18, %c9_19, %c0_20], %15 {strides = array<i32>} : memref<1x10x10x4xf32, #tpu.memory_space<vmem>>, vector<1x10x1x4xf32>,
    %c0_21 = arith.constant 0 : index
    %c1 = arith.constant 1 : index
    %c1_22 = arith.constant 1 : index
    %c0_23 = arith.constant 0 : index
    %18 = vector.load %arg7[%c0_21, %c1, %c1_22, %c0_23] : memref<1x10x10x4xf32, #tpu.memory_space<vmem>>, vector<1x8x8x4xf32>
    tpu.vector_store %arg7[%c0_21, %c1, %c1_22, %c0_23], %11 {strides = array<i32>} : memref<1x10x10x4xf32, #tpu.memory_space<vmem>>, vector<1x8x8x4xf32>,
    %c0_24 = arith.constant 0 : index
    %c0_25 = arith.constant 0 : index
    %c0_26 = arith.constant 0 : index
    %c0_27 = arith.constant 0 : index
    %19 = vector.load %arg7[%c0_24, %c0_25, %c0_26, %c0_27] : memref<1x10x10x4xf32, #tpu.memory_space<vmem>>, vector<1x8x8x4xf32>
    %c0_28 = arith.constant 0 : index
    %c0_29 = arith.constant 0 : index
    %c1_30 = arith.constant 1 : index
    %c0_31 = arith.constant 0 : index
    %20 = vector.load %arg7[%c0_28, %c0_29, %c1_30, %c0_31] : memref<1x10x10x4xf32, #tpu.memory_space<vmem>>, vector<1x8x8x4xf32>
    %c0_32 = arith.constant 0 : index
    %c0_33 = arith.constant 0 : index
    %c2 = arith.constant 2 : index
    %c0_34 = arith.constant 0 : index
    %21 = vector.load %arg7[%c0_32, %c0_33, %c2, %c0_34] : memref<1x10x10x4xf32, #tpu.memory_space<vmem>>, vector<1x8x8x4xf32>
    %22 = tpu.concatenate %19, %20, %21 in 3 : vector<1x8x8x4xf32>, vector<1x8x8x4xf32>, vector<1x8x8x4xf32> -> vector<1x8x8x12xf32>
    %23 = vector.shape_cast %22 : vector<1x8x8x12xf32> to vector<64x12xf32>
    %c0_35 = arith.constant 0 : index
    %c0_36 = arith.constant 0 : index
    %c0_37 = arith.constant 0 : index
    %24 = vector.load %arg2[%c0_35, %c0_36, %c0_37] : memref<3x12x8xf32, #tpu.memory_space<vmem>>, vector<1x12x8xf32>
    %25 = vector.shape_cast %24 : vector<1x12x8xf32> to vector<12x8xf32>
    %cst_38 = arith.constant dense<0.000000e+00> : vector<64x8xf32>
    %26 = tpu.matmul %23, %25, %cst_38 {dimension_numbers = #tpu.dot_dimension_numbers<[1], [0], [0], [1], [0, 0, 1, 1], [], []>} : vector<64x12xf32>, vector<12x8xf32>, vector<64x8xf32> -> vector<64x8xf32>
    %c0_39 = arith.constant 0 : index
    %c1_40 = arith.constant 1 : index
    %c0_41 = arith.constant 0 : index
    %c0_42 = arith.constant 0 : index
    %27 = vector.load %arg7[%c0_39, %c1_40, %c0_41, %c0_42] : memref<1x10x10x4xf32, #tpu.memory_space<vmem>>, vector<1x8x8x4xf32>
    %c0_43 = arith.constant 0 : index
    %c1_44 = arith.constant 1 : index
    %c1_45 = arith.constant 1 : index
    %c0_46 = arith.constant 0 : index
    %28 = vector.load %arg7[%c0_43, %c1_44, %c1_45, %c0_46] : memref<1x10x10x4xf32, #tpu.memory_space<vmem>>, vector<1x8x8x4xf32>
    %c0_47 = arith.constant 0 : index
    %c1_48 = arith.constant 1 : index
    %c2_49 = arith.constant 2 : index
    %c0_50 = arith.constant 0 : index
    %29 = vector.load %arg7[%c0_47, %c1_48, %c2_49, %c0_50] : memref<1x10x10x4xf32, #tpu.memory_space<vmem>>, vector<1x8x8x4xf32>
    %30 = tpu.concatenate %27, %28, %29 in 3 : vector<1x8x8x4xf32>, vector<1x8x8x4xf32>, vector<1x8x8x4xf32> -> vector<1x8x8x12xf32>
    %31 = vector.shape_cast %30 : vector<1x8x8x12xf32> to vector<64x12xf32>
    %c1_51 = arith.constant 1 : index
    %c0_52 = arith.constant 0 : index
    %c0_53 = arith.constant 0 : index
    %32 = vector.load %arg2[%c1_51, %c0_52, %c0_53] : memref<3x12x8xf32, #tpu.memory_space<vmem>>, vector<1x12x8xf32>
    %33 = vector.shape_cast %32 : vector<1x12x8xf32> to vector<12x8xf32>
    %cst_54 = arith.constant dense<0.000000e+00> : vector<64x8xf32>
    %34 = tpu.matmul %31, %33, %cst_54 {dimension_numbers = #tpu.dot_dimension_numbers<[1], [0], [0], [1], [0, 0, 1, 1], [], []>} : vector<64x12xf32>, vector<12x8xf32>, vector<64x8xf32> -> vector<64x8xf32>
    %35 = arith.addf %26, %34 : vector<64x8xf32>
    %c0_55 = arith.constant 0 : index
    %c2_56 = arith.constant 2 : index
    %c0_57 = arith.constant 0 : index
    %c0_58 = arith.constant 0 : index
    %36 = vector.load %arg7[%c0_55, %c2_56, %c0_57, %c0_58] : memref<1x10x10x4xf32, #tpu.memory_space<vmem>>, vector<1x8x8x4xf32>
    %c0_59 = arith.constant 0 : index
    %c2_60 = arith.constant 2 : index
    %c1_61 = arith.constant 1 : index
    %c0_62 = arith.constant 0 : index
    %37 = vector.load %arg7[%c0_59, %c2_60, %c1_61, %c0_62] : memref<1x10x10x4xf32, #tpu.memory_space<vmem>>, vector<1x8x8x4xf32>
    %c0_63 = arith.constant 0 : index
    %c2_64 = arith.constant 2 : index
    %c2_65 = arith.constant 2 : index
    %c0_66 = arith.constant 0 : index
    %38 = vector.load %arg7[%c0_63, %c2_64, %c2_65, %c0_66] : memref<1x10x10x4xf32, #tpu.memory_space<vmem>>, vector<1x8x8x4xf32>
    %39 = tpu.concatenate %36, %37, %38 in 3 : vector<1x8x8x4xf32>, vector<1x8x8x4xf32>, vector<1x8x8x4xf32> -> vector<1x8x8x12xf32>
    %40 = vector.shape_cast %39 : vector<1x8x8x12xf32> to vector<64x12xf32>
    %c2_67 = arith.constant 2 : index
    %c0_68 = arith.constant 0 : index
    %c0_69 = arith.constant 0 : index
    %41 = vector.load %arg2[%c2_67, %c0_68, %c0_69] : memref<3x12x8xf32, #tpu.memory_space<vmem>>, vector<1x12x8xf32>
    %42 = vector.shape_cast %41 : vector<1x12x8xf32> to vector<12x8xf32>
    %cst_70 = arith.constant dense<0.000000e+00> : vector<64x8xf32>
    %43 = tpu.matmul %40, %42, %cst_70 {dimension_numbers = #tpu.dot_dimension_numbers<[1], [0], [0], [1], [0, 0, 1, 1], [], []>} : vector<64x12xf32>, vector<12x8xf32>, vector<64x8xf32> -> vector<64x8xf32>
    %44 = arith.addf %35, %43 : vector<64x8xf32>
    %c0_71 = arith.constant 0 : index
    %c0_72 = arith.constant 0 : index
    %45 = vector.load %arg3[%c0_71, %c0_72] : memref<1x8xf32, #tpu.memory_space<vmem>>, vector<1x8xf32>
    %46 = vector.broadcast %45 : vector<1x8xf32> to vector<64x8xf32>
    %47 = arith.addf %44, %46 : vector<64x8xf32>
    %cst_73 = arith.constant 0.000000e+00 : f32
    %48 = vector.broadcast %cst_73 : f32 to vector<64x8xf32>
    %49 = arith.maximumf %47, %48 : vector<64x8xf32>
    %cst_74 = arith.constant 0.000000e+00 : f32
    %50 = vector.broadcast %cst_74 : f32 to vector<1x1x10x8xf32>
    %c0_75 = arith.constant 0 : index
    %c0_76 = arith.constant 0 : index
    %c0_77 = arith.constant 0 : index
    %c0_78 = arith.constant 0 : index
    %51 = vector.load %arg8[%c0_75, %c0_76, %c0_77, %c0_78] : memref<1x10x10x8xf32, #tpu.memory_space<vmem>>, vector<1x1x10x8xf32>
    tpu.vector_store %arg8[%c0_75, %c0_76, %c0_77, %c0_78], %50 {strides = array<i32>} : memref<1x10x10x8xf32, #tpu.memory_space<vmem>>, vector<1x1x10x8xf32>,
    %c0_79 = arith.constant 0 : index
    %c9_80 = arith.constant 9 : index
    %c0_81 = arith.constant 0 : index
    %c0_82 = arith.constant 0 : index
    %52 = vector.load %arg8[%c0_79, %c9_80, %c0_81, %c0_82] : memref<1x10x10x8xf32, #tpu.memory_space<vmem>>, vector<1x1x10x8xf32>
    tpu.vector_store %arg8[%c0_79, %c9_80, %c0_81, %c0_82], %50 {strides = array<i32>} : memref<1x10x10x8xf32, #tpu.memory_space<vmem>>, vector<1x1x10x8xf32>,
    %cst_83 = arith.constant 0.000000e+00 : f32
    %53 = vector.broadcast %cst_83 : f32 to vector<1x10x1x8xf32>
    %c0_84 = arith.constant 0 : index
    %c0_85 = arith.constant 0 : index
    %c0_86 = arith.constant 0 : index
    %c0_87 = arith.constant 0 : index
    %54 = vector.load %arg8[%c0_84, %c0_85, %c0_86, %c0_87] : memref<1x10x10x8xf32, #tpu.memory_space<vmem>>, vector<1x10x1x8xf32>
    tpu.vector_store %arg8[%c0_84, %c0_85, %c0_86, %c0_87], %53 {strides = array<i32>} : memref<1x10x10x8xf32, #tpu.memory_space<vmem>>, vector<1x10x1x8xf32>,
    %c0_88 = arith.constant 0 : index
    %c0_89 = arith.constant 0 : index
    %c9_90 = arith.constant 9 : index
    %c0_91 = arith.constant 0 : index
    %55 = vector.load %arg8[%c0_88, %c0_89, %c9_90, %c0_91] : memref<1x10x10x8xf32, #tpu.memory_space<vmem>>, vector<1x10x1x8xf32>
    tpu.vector_store %arg8[%c0_88, %c0_89, %c9_90, %c0_91], %53 {strides = array<i32>} : memref<1x10x10x8xf32, #tpu.memory_space<vmem>>, vector<1x10x1x8xf32>,
    %56 = vector.shape_cast %49 : vector<64x8xf32> to vector<1x8x8x8xf32>
    %c0_92 = arith.constant 0 : index
    %c1_93 = arith.constant 1 : index
    %c1_94 = arith.constant 1 : index
    %c0_95 = arith.constant 0 : index
    %57 = vector.load %arg8[%c0_92, %c1_93, %c1_94, %c0_95] : memref<1x10x10x8xf32, #tpu.memory_space<vmem>>, vector<1x8x8x8xf32>
    tpu.vector_store %arg8[%c0_92, %c1_93, %c1_94, %c0_95], %56 {strides = array<i32>} : memref<1x10x10x8xf32, #tpu.memory_space<vmem>>, vector<1x8x8x8xf32>,
    %c0_96 = arith.constant 0 : index
    %c0_97 = arith.constant 0 : index
    %c0_98 = arith.constant 0 : index
    %c0_99 = arith.constant 0 : index
    %58 = vector.load %arg8[%c0_96, %c0_97, %c0_98, %c0_99] : memref<1x10x10x8xf32, #tpu.memory_space<vmem>>, vector<1x8x8x8xf32>
    %c0_100 = arith.constant 0 : index
    %c0_101 = arith.constant 0 : index
    %c1_102 = arith.constant 1 : index
    %c0_103 = arith.constant 0 : index
    %59 = vector.load %arg8[%c0_100, %c0_101, %c1_102, %c0_103] : memref<1x10x10x8xf32, #tpu.memory_space<vmem>>, vector<1x8x8x8xf32>
    %c0_104 = arith.constant 0 : index
    %c0_105 = arith.constant 0 : index
    %c2_106 = arith.constant 2 : index
    %c0_107 = arith.constant 0 : index
    %60 = vector.load %arg8[%c0_104, %c0_105, %c2_106, %c0_107] : memref<1x10x10x8xf32, #tpu.memory_space<vmem>>, vector<1x8x8x8xf32>
    %61 = tpu.concatenate %58, %59, %60 in 3 : vector<1x8x8x8xf32>, vector<1x8x8x8xf32>, vector<1x8x8x8xf32> -> vector<1x8x8x24xf32>
    %62 = vector.shape_cast %61 : vector<1x8x8x24xf32> to vector<64x24xf32>
    %c0_108 = arith.constant 0 : index
    %c0_109 = arith.constant 0 : index
    %c0_110 = arith.constant 0 : index
    %63 = vector.load %arg4[%c0_108, %c0_109, %c0_110] : memref<3x24x128xf32, #tpu.memory_space<vmem>>, vector<1x24x128xf32>
    %64 = vector.shape_cast %63 : vector<1x24x128xf32> to vector<24x128xf32>
    %cst_111 = arith.constant dense<0.000000e+00> : vector<64x128xf32>
    %65 = tpu.matmul %62, %64, %cst_111 {dimension_numbers = #tpu.dot_dimension_numbers<[1], [0], [0], [1], [0, 0, 1, 1], [], []>} : vector<64x24xf32>, vector<24x128xf32>, vector<64x128xf32> -> vector<64x128xf32>
    %c0_112 = arith.constant 0 : index
    %c1_113 = arith.constant 1 : index
    %c0_114 = arith.constant 0 : index
    %c0_115 = arith.constant 0 : index
    %66 = vector.load %arg8[%c0_112, %c1_113, %c0_114, %c0_115] : memref<1x10x10x8xf32, #tpu.memory_space<vmem>>, vector<1x8x8x8xf32>
    %c0_116 = arith.constant 0 : index
    %c1_117 = arith.constant 1 : index
    %c1_118 = arith.constant 1 : index
    %c0_119 = arith.constant 0 : index
    %67 = vector.load %arg8[%c0_116, %c1_117, %c1_118, %c0_119] : memref<1x10x10x8xf32, #tpu.memory_space<vmem>>, vector<1x8x8x8xf32>
    %c0_120 = arith.constant 0 : index
    %c1_121 = arith.constant 1 : index
    %c2_122 = arith.constant 2 : index
    %c0_123 = arith.constant 0 : index
    %68 = vector.load %arg8[%c0_120, %c1_121, %c2_122, %c0_123] : memref<1x10x10x8xf32, #tpu.memory_space<vmem>>, vector<1x8x8x8xf32>
    %69 = tpu.concatenate %66, %67, %68 in 3 : vector<1x8x8x8xf32>, vector<1x8x8x8xf32>, vector<1x8x8x8xf32> -> vector<1x8x8x24xf32>
    %70 = vector.shape_cast %69 : vector<1x8x8x24xf32> to vector<64x24xf32>
    %c1_124 = arith.constant 1 : index
    %c0_125 = arith.constant 0 : index
    %c0_126 = arith.constant 0 : index
    %71 = vector.load %arg4[%c1_124, %c0_125, %c0_126] : memref<3x24x128xf32, #tpu.memory_space<vmem>>, vector<1x24x128xf32>
    %72 = vector.shape_cast %71 : vector<1x24x128xf32> to vector<24x128xf32>
    %cst_127 = arith.constant dense<0.000000e+00> : vector<64x128xf32>
    %73 = tpu.matmul %70, %72, %cst_127 {dimension_numbers = #tpu.dot_dimension_numbers<[1], [0], [0], [1], [0, 0, 1, 1], [], []>} : vector<64x24xf32>, vector<24x128xf32>, vector<64x128xf32> -> vector<64x128xf32>
    %74 = arith.addf %65, %73 : vector<64x128xf32>
    %c0_128 = arith.constant 0 : index
    %c2_129 = arith.constant 2 : index
    %c0_130 = arith.constant 0 : index
    %c0_131 = arith.constant 0 : index
    %75 = vector.load %arg8[%c0_128, %c2_129, %c0_130, %c0_131] : memref<1x10x10x8xf32, #tpu.memory_space<vmem>>, vector<1x8x8x8xf32>
    %c0_132 = arith.constant 0 : index
    %c2_133 = arith.constant 2 : index
    %c1_134 = arith.constant 1 : index
    %c0_135 = arith.constant 0 : index
    %76 = vector.load %arg8[%c0_132, %c2_133, %c1_134, %c0_135] : memref<1x10x10x8xf32, #tpu.memory_space<vmem>>, vector<1x8x8x8xf32>
    %c0_136 = arith.constant 0 : index
    %c2_137 = arith.constant 2 : index
    %c2_138 = arith.constant 2 : index
    %c0_139 = arith.constant 0 : index
    %77 = vector.load %arg8[%c0_136, %c2_137, %c2_138, %c0_139] : memref<1x10x10x8xf32, #tpu.memory_space<vmem>>, vector<1x8x8x8xf32>
    %78 = tpu.concatenate %75, %76, %77 in 3 : vector<1x8x8x8xf32>, vector<1x8x8x8xf32>, vector<1x8x8x8xf32> -> vector<1x8x8x24xf32>
    %79 = vector.shape_cast %78 : vector<1x8x8x24xf32> to vector<64x24xf32>
    %c2_140 = arith.constant 2 : index
    %c0_141 = arith.constant 0 : index
    %c0_142 = arith.constant 0 : index
    %80 = vector.load %arg4[%c2_140, %c0_141, %c0_142] : memref<3x24x128xf32, #tpu.memory_space<vmem>>, vector<1x24x128xf32>
    %81 = vector.shape_cast %80 : vector<1x24x128xf32> to vector<24x128xf32>
    %cst_143 = arith.constant dense<0.000000e+00> : vector<64x128xf32>
    %82 = tpu.matmul %79, %81, %cst_143 {dimension_numbers = #tpu.dot_dimension_numbers<[1], [0], [0], [1], [0, 0, 1, 1], [], []>} : vector<64x24xf32>, vector<24x128xf32>, vector<64x128xf32> -> vector<64x128xf32>
    %83 = arith.addf %74, %82 : vector<64x128xf32>
    %c0_144 = arith.constant 0 : index
    %c0_145 = arith.constant 0 : index
    %84 = vector.load %arg5[%c0_144, %c0_145] : memref<1x128xf32, #tpu.memory_space<vmem>>, vector<1x128xf32>
    %85 = vector.broadcast %84 : vector<1x128xf32> to vector<64x128xf32>
    %86 = arith.addf %83, %85 : vector<64x128xf32>
    %cst_146 = arith.constant 0.000000e+00 : f32
    %87 = vector.broadcast %cst_146 : f32 to vector<64x128xf32>
    %88 = arith.maximumf %86, %87 : vector<64x128xf32>
    %89 = vector.shape_cast %88 : vector<64x128xf32> to vector<1x64x128xf32>
    %c0_147 = arith.constant 0 : index
    %c0_148 = arith.constant 0 : index
    %c0_149 = arith.constant 0 : index
    %90 = vector.load %arg6[%c0_147, %c0_148, %c0_149] : memref<1x64x128xf32, #tpu.memory_space<vmem>>, vector<1x64x128xf32>
    tpu.vector_store %arg6[%c0_147, %c0_148, %c0_149], %89 {strides = array<i32>} : memref<1x64x128xf32, #tpu.memory_space<vmem>>, vector<1x64x128xf32>,
    return
  }
  func.func @transform_0(%arg0: i32) -> (i32, i32, i32, i32, i32, i32) {
    %c0_i32 = arith.constant 0 : i32
    %c0_i32_0 = arith.constant 0 : i32
    %c0_i32_1 = arith.constant 0 : i32
    %c0_i32_2 = arith.constant 0 : i32
    %c0_i32_3 = arith.constant 0 : i32
    %c0_i32_4 = arith.constant 0 : i32
    return %arg0, %c0_i32, %c0_i32_0, %c0_i32_1, %c0_i32_2, %c0_i32_3 : i32, i32, i32, i32, i32, i32
  }
  func.func @transform_1(%arg0: i32) -> (i32, i32, i32) {
    %c0_i32 = arith.constant 0 : i32
    %c0_i32_0 = arith.constant 0 : i32
    %c0_i32_1 = arith.constant 0 : i32
    %c0_i32_2 = arith.constant 0 : i32
    return %c0_i32, %c0_i32_0, %c0_i32_1 : i32, i32, i32
  }
  func.func @transform_2(%arg0: i32) -> (i32, i32) {
    %c0_i32 = arith.constant 0 : i32
    %c0_i32_0 = arith.constant 0 : i32
    %c0_i32_1 = arith.constant 0 : i32
    return %c0_i32, %c0_i32_0 : i32, i32
  }
  func.func @transform_3(%arg0: i32) -> (i32, i32, i32) {
    %c0_i32 = arith.constant 0 : i32
    %c0_i32_0 = arith.constant 0 : i32
    %c0_i32_1 = arith.constant 0 : i32
    %c0_i32_2 = arith.constant 0 : i32
    return %c0_i32, %c0_i32_0, %c0_i32_1 : i32, i32, i32
  }
  func.func @transform_4(%arg0: i32) -> (i32, i32) {
    %c0_i32 = arith.constant 0 : i32
    %c0_i32_0 = arith.constant 0 : i32
    %c0_i32_1 = arith.constant 0 : i32
    return %c0_i32, %c0_i32_0 : i32, i32
  }
  func.func @transform_5(%arg0: i32) -> (i32, i32, i32) {
    %c0_i32 = arith.constant 0 : i32
    %c0_i32_0 = arith.constant 0 : i32
    %c0_i32_1 = arith.constant 0 : i32
    return %arg0, %c0_i32, %c0_i32_0 : i32, i32, i32
  }
}

</mosaic_0001>

<bundles_post_ra>
// kernel: tpu_custom_call.1
= control target key start
LH: loop header
LB: loop body
LE: loop exit
PB: predicated region body
PF: predicated region fallthrough
CT: control target
= control target key end

     0   :  { %10 = vsyncpa [#allocation5], 0  ;;  %s4098_s0 = inlined_call_operand.vmem [shape: f32[2,8,2,8,2,4], index: 0, kind: input, shape index: {}]   ;;  %s4099_s1 = inlined_call_operand.vmem [shape: f32[3,12,8], index: 1, kind: input, shape index: {}]   ;;  %s4100_s2 = inlined_call_operand.vmem [shape: f32[1,8], index: 2, kind: input, shape index: {}]   ;;  %s4101_s3 = inlined_call_operand.vmem [shape: f32[3,24,128], index: 3, kind: input, shape index: {}]   ;;  %s4102_s4 = inlined_call_operand.vmem [shape: f32[1,128], index: 4, kind: input, shape index: {}]   ;;  %s4103_s5 = inlined_call_operand.hbm [shape: f32[2,64,128], index: 5, kind: output, shape index: {}]  }
   0x1   :  { %12 = vsyncpa [#allocation5 + $0x1], 0  ;;  %s3220_s18 = smov 0   ;;  %s3222_s19 = smov 0  }
   0x2   :  { %s3224_s20 = smov 0   ;;  %s3226_s21 = smov 0  }
   0x3 LB: > { %s3241_s22 = sadd.s32 4294967295, %s3181_s21   ;;  %s2770_s23 = sadd.s32 4294967294, %s3181_s21   ;;  %s3181_s21 = sphi %s3226_s21, %s4111_s21   ;;  %s3177_s20 = sphi %s3224_s20, %s4110_s20   ;;  %s3173_s19 = sphi %s3222_s19, %s4109_s19   ;;  %s3169_s18 = sphi %s3220_s18, %s4108_s18  }
   0x4   : > { %s3245_s24 = sadd.s32 1, %s3181_s21   ;;  %s135_s25 = sadd.s32 1, %s3177_s20 }
   0x5   : > { %s132_s26 = ssub.s32 %s3181_s21, %s3245_s24  ;;  %p145_p0 = scmp.ne.s32.totalorder %s3177_s20, %s3173_s19 }
   0x6   : > { %p133_p1 = scmp.eq.s32.totalorder %s132_s26, 0  ;;  %p146_p2 = scmp.eq.s32.totalorder %s3241_s22, 1 }
   0x7   : > { %p151_p3 = scmp.ne.s32.totalorder %s3173_s19, %s3169_s18  ;;  %p152_p4 = scmp.eq.s32.totalorder %s2770_s23, 1 }
   0x8   : > { %s3256_s27 = scalar_select %p133_p1, %s3177_s20, %s135_s25  }
   0x9   : > { %p3258_p5 = por %p146_p2, %p145_p0  ;;  %p3262_p6 = por %p152_p4, %p151_p3 }
   0xa   : > { %p2773_p7 = scmp.ge.s32.totalorder %s3181_s21, 1  ;;  %p190_p8 = scmp.lt.s32.totalorder %s3181_s21, 3 }
   0xc   : > { %p191_p9 = pnand %p2773_p7, %p190_p8 }
   0xd   : > { %p218_p10 = scmp.lt.s32.totalorder (!%p191_p9), %s3241_s22, 1  ;;  %vm927_vm0 = vcmask (!%p191_p9), 31744   ;;  %vm934_vm1 = vcmask (!%p191_p9), 24576   ;;  %v3183_v0 = vmov (!%p191_p9), 0.0   ;;  %vm929_vm2 = vcmask (!%p191_p9), 25600   ;;  %s3184_s10 = smov (!%p191_p9), 8  }
   0xe   : > { %194 = sbr.rel (%p191_p9) target bundleno = 976 (0x3d0), region = 40  ;;  %946 = vst.msk [vmem:[#allocation2 + $0x19] sm:$0x1] (!%p191_p9), %vm934_vm1, %v3183_v0  ;;  %936 = vst.msk [vmem:[#allocation2 + $0x10] sm:$0x1] (!%p191_p9), %vm934_vm1, %v3183_v0  ;;  %vm1020_vm3 = vcmask (!%p191_p9), 1041409  }
   0xf   : > { %928 = vst.msk [vmem:[#allocation2] sm:$0xff] (!%p191_p9), %vm927_vm0, %v3183_v0  ;;  %932 = vst.msk [vmem:[#allocation2 + $0x90] sm:$0xff] (!%p191_p9), %vm927_vm0, %v3183_v0  ;;  %vm1023_vm4 = vcmask (!%p191_p9), 1042434   ;;  %vm1026_vm5 = vcmask (!%p191_p9), 1043459   ;;  %vm1029_vm6 = vcmask (!%p191_p9), 1044484   ;;  %vm1032_vm7 = vcmask (!%p191_p9), 1045509  }
  0x10   : > { %937 = vst.msk [vmem:[#allocation2 + $0x20] sm:$0x1] (!%p191_p9), %vm934_vm1, %v3183_v0  ;;  %938 = vst.msk [vmem:[#allocation2 + $0x30] sm:$0x1] (!%p191_p9), %vm934_vm1, %v3183_v0  ;;  %vm1035_vm8 = vcmask (!%p191_p9), 1046534   ;;  %vm1038_vm9 = vcmask (!%p191_p9), 1047559  }
  0x11   : > { %939 = vst.msk [vmem:[#allocation2 + $0x40] sm:$0x1] (!%p191_p9), %vm934_vm1, %v3183_v0  ;;  %940 = vst.msk [vmem:[#allocation2 + $0x50] sm:$0x1] (!%p191_p9), %vm934_vm1, %v3183_v0  ;;  %s3185_s11 = smov (!%p191_p9), 4   ;;  %vm1394_vm10 = vcmask (!%p191_p9), 1043456  }
  0x12   : > { %941 = vst.msk [vmem:[#allocation2 + $0x60] sm:$0x1] (!%p191_p9), %vm934_vm1, %v3183_v0  ;;  %942 = vst.msk [vmem:[#allocation2 + $0x70] sm:$0x1] (!%p191_p9), %vm934_vm1, %v3183_v0  ;;  %vm1251_vm11 = vcmask (!%p191_p9), 64512   ;;  %vm3186_vm12 = vmmov (!%p191_p9), 1  }
  0x13   : > { %943 = vst.msk [vmem:[#allocation2 + $0x80] sm:$0x1] (!%p191_p9), %vm934_vm1, %v3183_v0  ;;  %947 = vst.msk [vmem:[#allocation2 + $0x29] sm:$0x1] (!%p191_p9), %vm934_vm1, %v3183_v0  ;;  %vm1369_vm14 = vcmask (!%p191_p9), 97280   ;;  %vm1907_vm15 = vcmask (!%p191_p9), 58368  }
  0x14   : > { %948 = vst.msk [vmem:[#allocation2 + $0x39] sm:$0x1] (!%p191_p9), %vm934_vm1, %v3183_v0  ;;  %949 = vst.msk [vmem:[#allocation2 + $0x49] sm:$0x1] (!%p191_p9), %vm934_vm1, %v3183_v0  ;;  %s3187_s8 = smov (!%p191_p9), 16   ;;  %s215_s15 = sand.u32 (!%p191_p9), 1, %s3173_s19  }
  0x15   : > { %950 = vst.msk [vmem:[#allocation2 + $0x59] sm:$0x1] %vm934_vm1, %v3183_v0  ;;  %951 = vst.msk [vmem:[#allocation2 + $0x69] sm:$0x1] %vm934_vm1, %v3183_v0  ;;  %s219_s30 = scalar_select %p218_p10, %s3241_s22, 1 }
  0x16   : > { %952 = vst.msk [vmem:[#allocation2 + $0x79] sm:$0x1] %vm934_vm1, %v3183_v0  ;;  %953 = vst.msk [vmem:[#allocation2 + $0x89] sm:$0x1] %vm934_vm1, %v3183_v0  ;;  %s2774_s23 = sshll.u32 %s215_s15, 6  ;;  %s2846_s26 = sshll.u32 %s3241_s22, 10 }
  0x17   : > { %935 = vst.msk [vmem:[#allocation2] sm:$0x1] %vm934_vm1, %v3183_v0  ;;  %944 = vst.msk [vmem:[#allocation2 + $0x90] sm:$0x1] %vm934_vm1, %v3183_v0  ;;  %s2845_s6 = sshll.u32 %s219_s30, 8  ;;  %s217_s25 = scalar_lea.vmem [#allocation4], %s2774_s23 }
  0x18   : > { %930 = vst.msk [vmem:[#allocation2 + $0x8] sm:$0x3] %vm929_vm2, %v3183_v0  ;;  %933 = vst.msk [vmem:[#allocation2 + $0x98] sm:$0x3] %vm929_vm2, %v3183_v0  ;;  %s3317_s9 = scalar_lea.vmem %s4098_s0, %s2845_s6  ;;  %vm2038_vm2 = vcmask 130048   ;;  %s2708_s30 = sshll.u32 %s217_s25, 4  ;;  %s4052_s30 = int_to_ptr.vmem [resolvable:$true] %s2708_s30 }
  0x19   : > { %945 = vst.msk [vmem:[#allocation2 + $0x9] sm:$0x1] %vm934_vm1, %v3183_v0  ;;  %954 = vst.msk [vmem:[#allocation2 + $0x99] sm:$0x1] %vm934_vm1, %v3183_v0  ;;  %v223_v1 = vld [vmem:[%s3317_s9] sm:$0x3] }
  0x1a   : > { %v224_v2 = vld [vmem:[%s3317_s9 + $0x2] sm:$0x3]  ;;  %v225_v3 = vld [vmem:[%s3317_s9 + $0x4] sm:$0x3]  ;;  %v226_v4 = vld [vmem:[%s3317_s9 + $0x6] sm:$0x3] }
  0x1b   : > { %v227_v5 = vld [vmem:[%s3317_s9 + $0x8] sm:$0x3]  ;;  %v228_v6 = vld [vmem:[%s3317_s9 + $0xa] sm:$0x3]  ;;  %v229_v7 = vld [vmem:[%s3317_s9 + $0xc] sm:$0x3] }
  0x1c   : > { %v230_v8 = vld [vmem:[%s3317_s9 + $0xe] sm:$0x3]  ;;  %v231_v9 = vld [vmem:[%s3317_s9 + $0x10] sm:$0x3]  ;;  %v232_v10 = vld [vmem:[%s3317_s9 + $0x12] sm:$0x3] }
  0x1d   : > { %v233_v11 = vld [vmem:[%s3317_s9 + $0x14] sm:$0x3]  ;;  %v234_v12 = vld [vmem:[%s3317_s9 + $0x16] sm:$0x3]  ;;  %v415_v13 = vrot.slane %v223_v1, 1  ;;  %v416_v14 = vrot.slane %v224_v2, 1  ;;  %vm3562_vm13 = vmpackc.low %vm1394_vm10, %vm3186_vm12 }
  0x1e   : > { %v417_v15 = vrot.slane %v225_v3, 1  ;;  %v418_v16 = vrot.slane %v226_v4, 1  ;;  %v235_v17 = vld [vmem:[%s3317_s9 + $0x18] sm:$0x3]  ;;  %v419_v18 = vrot.slane %v227_v5, 1  ;;  %v420_v19 = vrot.slane %v228_v6, 1 }
  0x1f   : > { %v421_v20 = vrot.slane %v229_v7, 1  ;;  %v422_v21 = vrot.slane %v230_v8, 1  ;;  %v236_v22 = vld [vmem:[%s3317_s9 + $0x1a] sm:$0x3]  ;;  %v237_v23 = vld [vmem:[%s3317_s9 + $0x1c] sm:$0x3]  ;;  %v543_v25 = vmax.f32 %v223_v1, %v415_v13  ;;  %v544_v26 = vmax.f32 %v224_v2, %v416_v14 }
  0x20   : > { %v238_v24 = vld [vmem:[%s3317_s9 + $0x1e] sm:$0x3]  ;;  %v545_v27 = vmax.f32 %v225_v3, %v417_v15  ;;  %v546_v28 = vmax.f32 %v226_v4, %v418_v16  ;;  %v547_v29 = vmax.f32 %v227_v5, %v419_v18  ;;  %v548_v30 = vmax.f32 %v228_v6, %v420_v19  ;;  %v239_v49 = vld [vmem:[%s3317_s9 + $0x20] sm:$0x3]  ;;  %v240_v54 = vld [vmem:[%s3317_s9 + $0x22] sm:$0x3] }
  0x21   : > { %v549_v31 = vmax.f32 %v229_v7, %v421_v20  ;;  %v550_v32 = vmax.f32 %v230_v8, %v422_v21  ;;  %v671_v33 = vrot.slane %v231_v9, 1  ;;  %v672_v34 = vrot.slane %v232_v10, 1  ;;  %v241_v55 = vld [vmem:[%s3317_s9 + $0x24] sm:$0x3]  ;;  %v242_v60 = vld [vmem:[%s3317_s9 + $0x26] sm:$0x3] }
  0x22   : > { %v673_v35 = vrot.slane %v233_v11, 1  ;;  %v674_v36 = vrot.slane %v234_v12, 1  ;;  %v675_v37 = vrot.slane %v235_v17, 1  ;;  %v676_v38 = vrot.slane %v236_v22, 1  ;;  %v243_v61 = vld [vmem:[%s3317_s9 + $0x28] sm:$0x3] }
  0x23   : > { %v677_v39 = vrot.slane %v237_v23, 1  ;;  %v678_v40 = vrot.slane %v238_v24, 1  ;;  %v799_v41 = vmax.f32 %v231_v9, %v671_v33  ;;  %v800_v42 = vmax.f32 %v232_v10, %v672_v34  ;;  %v244_v62 = vld [vmem:[%s3317_s9 + $0x2a] sm:$0x3]  ;;  %v245_v3 = vld [vmem:[%s3317_s9 + $0x2c] sm:$0x3] }
  0x24   : > { %v801_v43 = vmax.f32 %v233_v11, %v673_v35  ;;  %v802_v44 = vmax.f32 %v234_v12, %v674_v36  ;;  %v803_v45 = vmax.f32 %v235_v17, %v675_v37  ;;  %v804_v46 = vmax.f32 %v236_v22, %v676_v38  ;;  %v246_v9 = vld [vmem:[%s3317_s9 + $0x2e] sm:$0x3]  ;;  %v247_v15 = vld [vmem:[%s3317_s9 + $0x30] sm:$0x3]  ;;  %v248_v20 = vld [vmem:[%s3317_s9 + $0x32] sm:$0x3] }
  0x25   : > { %v805_v47 = vmax.f32 %v237_v23, %v677_v39  ;;  %v806_v48 = vmax.f32 %v238_v24, %v678_v40  ;;  %v863_v50 = vmax.f32 %v543_v25, %v799_v41  ;;  %v864_v51 = vmax.f32 %v544_v26, %v800_v42  ;;  %v249_v21 = vld [vmem:[%s3317_s9 + $0x34] sm:$0x3]  ;;  %v250_v26 = vld [vmem:[%s3317_s9 + $0x36] sm:$0x3]  ;;  %v253_v33 = vld [vmem:[%s3317_s9 + $0x3c] sm:$0x3] }
  0x26   : > { %v865_v52 = vmax.f32 %v545_v27, %v801_v43  ;;  %v866_v53 = vmax.f32 %v546_v28, %v802_v44  ;;  %v867_v56 = vmax.f32 %v547_v29, %v803_v45  ;;  %v868_v57 = vmax.f32 %v548_v30, %v804_v46  ;;  %v251_v27 = vld [vmem:[%s3317_s9 + $0x38] sm:$0x3]  ;;  %v252_v28 = vld [vmem:[%s3317_s9 + $0x3a] sm:$0x3]  ;;  %v254_v34 = vld [vmem:[%s3317_s9 + $0x3e] sm:$0x3] }
  0x27   : > { %v869_v58 = vmax.f32 %v549_v31, %v805_v47  ;;  %v870_v59 = vmax.f32 %v550_v32, %v806_v48  ;;  %v1019_v63 = vrot.slane %v864_v51, 7  ;;  %v423_v4 = vrot.slane %v239_v49, 1  ;;  %1906 = vst.msk [vmem:[#allocation3] sm:$0xff] %vm1251_vm11, %v3183_v0  ;;  %1910 = vst.msk [vmem:[#allocation3 + $0x90] sm:$0xff] %vm1251_vm11, %v3183_v0  ;;  %s4056_s22 = scalar_lea.sflag [#allocation5], %s215_s15 }
  0x28   : > { %v1022_v1 = vrot.slane %v865_v52, 6  ;;  %v1025_v2 = vrot.slane %v866_v53, 5  ;;  %v1028_v5 = vrot.slane %v867_v56, 4  ;;  %v1031_v6 = vrot.slane %v868_v57, 3  ;;  %1908 = vst.msk [vmem:[#allocation3 + $0x8] sm:$0x3] %vm1907_vm15, %v3183_v0 }
  0x29   : > { %v1034_v7 = vrot.slane %v869_v58, 2  ;;  %v1037_v8 = vrot.slane %v870_v59, 1  ;;  %v1021_v10 = vsel %vm1020_vm3, %v1019_v63, %v863_v50  ;;  %v424_v11 = vrot.slane %v240_v54, 1  ;;  %v272_v59 = vld [vmem:[%s3317_s9 + $0x62] sm:$0x3] }
  0x2a   : > { %v425_v12 = vrot.slane %v241_v55, 1  ;;  %v426_v13 = vrot.slane %v242_v60, 1  ;;  %v1024_v14 = vsel %vm1023_vm4, %v1022_v1, %v1021_v10  ;;  %v427_v16 = vrot.slane %v243_v61, 1  ;;  %v273_v1 = vld [vmem:[%s3317_s9 + $0x64] sm:$0x3] }
  0x2b   : > { %v428_v17 = vrot.slane %v244_v62, 1  ;;  %v429_v18 = vrot.slane %v245_v3, 1  ;;  %v1027_v19 = vsel %vm1026_vm5, %v1025_v2, %v1024_v14  ;;  %v430_v22 = vrot.slane %v246_v9, 1  ;;  %v274_v2 = vld [vmem:[%s3317_s9 + $0x66] sm:$0x3] }
  0x2c   : > { %v551_v23 = vmax.f32 %v239_v49, %v423_v4  ;;  %v552_v24 = vmax.f32 %v240_v54, %v424_v11  ;;  %v1030_v25 = vsel %vm1029_vm6, %v1028_v5, %v1027_v19  ;;  %v553_v29 = vmax.f32 %v241_v55, %v425_v12  ;;  %v271_v54 = vld [vmem:[%s3317_s9 + $0x60] sm:$0x3]  ;;  %v278_v14 = vld [vmem:[%s3317_s9 + $0x6e] sm:$0x3]  ;;  %1911 = vst.msk [vmem:[#allocation3 + $0x98] sm:$0x3] %vm1907_vm15, %v3183_v0 }
  0x2d   : > { %v554_v30 = vmax.f32 %v242_v60, %v426_v13  ;;  %v555_v31 = vmax.f32 %v243_v61, %v427_v16  ;;  %v1033_v32 = vsel %vm1032_vm7, %v1031_v6, %v1030_v25  ;;  %v556_v35 = vmax.f32 %v244_v62, %v428_v17 }
  0x2e   : > { %v557_v36 = vmax.f32 %v245_v3, %v429_v18  ;;  %v558_v37 = vmax.f32 %v246_v9, %v430_v22  ;;  %v1036_v38 = vsel %vm1035_vm8, %v1034_v7, %v1033_v32  ;;  %v679_v39 = vrot.slane %v247_v15, 1  ;;  %v275_v3 = vld [vmem:[%s3317_s9 + $0x68] sm:$0x3]  ;;  %v276_v7 = vld [vmem:[%s3317_s9 + $0x6a] sm:$0x3] }
  0x2f   : > { %v680_v40 = vrot.slane %v248_v20, 1  ;;  %v681_v41 = vrot.slane %v249_v21, 1  ;;  %v1039_v42 = vsel %vm1038_vm9, %v1037_v8, %v1036_v38  ;;  %v682_v43 = vrot.slane %v250_v26, 1  ;;  %v277_v8 = vld [vmem:[%s3317_s9 + $0x6c] sm:$0x3] }
  0x30   : > { %v683_v44 = vrot.slane %v251_v27, 1  ;;  %v684_v45 = vrot.slane %v252_v28, 1  ;;  %1147 = vst.msk [vmem:[#allocation2 + $0x11] sm:$0xff] %vm927_vm0, %v1039_v42  ;;  %v685_v46 = vrot.slane %v253_v33, 1  ;;  %v686_v47 = vrot.slane %v254_v34, 1 }
  0x31   : > { %v807_v48 = vmax.f32 %v247_v15, %v679_v39  ;;  %v808_v49 = vmax.f32 %v248_v20, %v680_v40  ;;  %v809_v50 = vmax.f32 %v249_v21, %v681_v41  ;;  %v810_v51 = vmax.f32 %v250_v26, %v682_v43  ;;  %v279_v18 = vld [vmem:[%s3317_s9 + $0x70] sm:$0x3]  ;;  %v281_v32 = vld [vmem:[%s3317_s9 + $0x74] sm:$0x3]  ;;  %v284_v39 = vld [vmem:[%s3317_s9 + $0x7a] sm:$0x3] }
  0x32   : > { %v811_v52 = vmax.f32 %v251_v27, %v683_v44  ;;  %v812_v53 = vmax.f32 %v252_v28, %v684_v45  ;;  %v813_v55 = vmax.f32 %v253_v33, %v685_v46  ;;  %v814_v56 = vmax.f32 %v254_v34, %v686_v47  ;;  %v280_v27 = vld [vmem:[%s3317_s9 + $0x72] sm:$0x3]  ;;  %v282_v33 = vld [vmem:[%s3317_s9 + $0x76] sm:$0x3]  ;;  %v283_v34 = vld [vmem:[%s3317_s9 + $0x78] sm:$0x3] }
  0x33   : > { %v871_v57 = vmax.f32 %v551_v23, %v807_v48  ;;  %v872_v58 = vmax.f32 %v552_v24, %v808_v49  ;;  %v873_v60 = vmax.f32 %v553_v29, %v809_v50  ;;  %v874_v61 = vmax.f32 %v554_v30, %v810_v51  ;;  %v285_v40 = vld [vmem:[%s3317_s9 + $0x7c] sm:$0x3]  ;;  %v286_v41 = vld [vmem:[%s3317_s9 + $0x7e] sm:$0x3] }
  0x34   : > { %v875_v62 = vmax.f32 %v555_v31, %v811_v52  ;;  %v876_v63 = vmax.f32 %v556_v35, %v812_v53  ;;  %v877_v4 = vmax.f32 %v557_v36, %v813_v55  ;;  %v878_v5 = vmax.f32 %v558_v37, %v814_v56 }
  0x35   : > { %v1040_v6 = vrot.slane %v872_v58, 7  ;;  %v439_v9 = vrot.slane %v271_v54, 1  ;;  %v1042_v10 = vrot.slane %v873_v60, 6  ;;  %v1044_v11 = vrot.slane %v874_v61, 5 }
  0x36   : > { %v1046_v12 = vrot.slane %v875_v62, 4  ;;  %v1048_v13 = vrot.slane %v876_v63, 3  ;;  %v1050_v16 = vrot.slane %v877_v4, 2  ;;  %v1052_v17 = vrot.slane %v878_v5, 1 }
  0x37   : > { %v1041_v15 = vsel %vm1020_vm3, %v1040_v6, %v871_v57  ;;  %v440_v19 = vrot.slane %v272_v59, 1  ;;  %v1278_v20 = vld [vmem:[#allocation2 + $0x12] sm:$0xff]  ;;  %v441_v23 = vrot.slane %v273_v1, 1  ;;  %v442_v24 = vrot.slane %v274_v2, 1 }
  0x38   : > { %v1270_v21 = vld [vmem:[#allocation2 + $0x11] sm:$0xff]  ;;  %v1043_v22 = vsel %vm1023_vm4, %v1042_v10, %v1041_v15  ;;  %v443_v25 = vrot.slane %v275_v3, 1  ;;  %1326 = vrot.lane.b32.xlu1 %v1278_v20, %s3184_s10  ;;  %v444_v28 = vrot.slane %v276_v7, 1  ;;  %v445_v29 = vrot.slane %v277_v8, 1  ;;  %v260_v15 = vld [vmem:[%s3317_s9 + $0x4a] sm:$0x3] }
  0x39   : > { %1294 = vrot.lane.b32.xlu0 %v1270_v21, %s3185_s11  ;;  %v1045_v26 = vsel %vm1026_vm5, %v1044_v11, %v1043_v22  ;;  %v446_v30 = vrot.slane %v278_v14, 1  ;;  %v567_v35 = vmax.f32 %v271_v54, %v439_v9  ;;  %v568_v36 = vmax.f32 %v272_v59, %v440_v19  ;;  %v261_v19 = vld [vmem:[%s3317_s9 + $0x4c] sm:$0x3] }
  0x3a   : > { %v1047_v31 = vsel %vm1029_vm6, %v1046_v12, %v1045_v26  ;;  %v569_v37 = vmax.f32 %v273_v1, %v441_v23  ;;  %v570_v42 = vmax.f32 %v274_v2, %v442_v24  ;;  %v571_v43 = vmax.f32 %v275_v3, %v443_v25  ;;  %v255_v2 = vld [vmem:[%s3317_s9 + $0x40] sm:$0x3]  ;;  %v262_v25 = vld [vmem:[%s3317_s9 + $0x4e] sm:$0x3] }
  0x3b   : > { %v1049_v38 = vsel %vm1032_vm7, %v1048_v13, %v1047_v31  ;;  %v572_v44 = vmax.f32 %v276_v7, %v444_v28  ;;  %v573_v46 = vmax.f32 %v277_v8, %v445_v29  ;;  %v574_v47 = vmax.f32 %v278_v14, %v446_v30  ;;  %v256_v7 = vld [vmem:[%s3317_s9 + $0x42] sm:$0x3]  ;;  %v257_v8 = vld [vmem:[%s3317_s9 + $0x44] sm:$0x3]  ;;  %v258_v13 = vld [vmem:[%s3317_s9 + $0x46] sm:$0x3] }
  0x3c   : > { %v1051_v45 = vsel %vm1035_vm8, %v1050_v16, %v1049_v38  ;;  %v695_v48 = vrot.slane %v279_v18, 1  ;;  %v696_v50 = vrot.slane %v280_v27, 1  ;;  %v697_v51 = vrot.slane %v281_v32, 1  ;;  %v259_v14 = vld [vmem:[%s3317_s9 + $0x48] sm:$0x3] }
  0x3d   : > { %v1053_v49 = vsel %vm1038_vm9, %v1052_v17, %v1051_v45  ;;  %v698_v52 = vrot.slane %v282_v33, 1  ;;  %v699_v53 = vrot.slane %v283_v34, 1  ;;  %v700_v54 = vrot.slane %v284_v39, 1  ;;  %v264_v38 = vld [vmem:[%s3317_s9 + $0x52] sm:$0x3] }
  0x3e   : > { %1148 = vst.msk [vmem:[#allocation2 + $0x21] sm:$0xff] %vm927_vm0, %v1053_v49  ;;  %v701_v55 = vrot.slane %v285_v40, 1  ;;  %v702_v56 = vrot.slane %v286_v41, 1  ;;  %v823_v57 = vmax.f32 %v279_v18, %v695_v48  ;;  %v824_v58 = vmax.f32 %v280_v27, %v696_v50  ;;  %v267_v45 = vld [vmem:[%s3317_s9 + $0x58] sm:$0x3] }
  0x3f   : > { %v825_v59 = vmax.f32 %v281_v32, %v697_v51  ;;  %v826_v60 = vmax.f32 %v282_v33, %v698_v52  ;;  %v827_v61 = vmax.f32 %v283_v34, %v699_v53  ;;  %v828_v62 = vmax.f32 %v284_v39, %v700_v54  ;;  %v263_v33 = vld [vmem:[%s3317_s9 + $0x50] sm:$0x3]  ;;  %v265_v39 = vld [vmem:[%s3317_s9 + $0x54] sm:$0x3]  ;;  %v269_v51 = vld [vmem:[%s3317_s9 + $0x5c] sm:$0x3] }
  0x40   : > { %v829_v63 = vmax.f32 %v285_v40, %v701_v55  ;;  %v830_v1 = vmax.f32 %v286_v41, %v702_v56  ;;  %v887_v3 = vmax.f32 %v567_v35, %v823_v57  ;;  %v888_v4 = vmax.f32 %v568_v36, %v824_v58  ;;  %v270_v52 = vld [vmem:[%s3317_s9 + $0x5e] sm:$0x3] }
  0x41   : > { %v889_v5 = vmax.f32 %v569_v37, %v825_v59  ;;  %v890_v6 = vmax.f32 %v570_v42, %v826_v60  ;;  %v891_v9 = vmax.f32 %v571_v43, %v827_v61  ;;  %v892_v10 = vmax.f32 %v572_v44, %v828_v62  ;;  %v266_v44 = vld [vmem:[%s3317_s9 + $0x56] sm:$0x3] }
  0x42   : > { %v893_v11 = vmax.f32 %v573_v46, %v829_v63  ;;  %v894_v12 = vmax.f32 %v574_v47, %v830_v1  ;;  %v1068_v16 = vrot.slane %v888_v4, 7  ;;  %v431_v20 = vrot.slane %v255_v2, 1  ;;  %v268_v46 = vld [vmem:[%s3317_s9 + $0x5a] sm:$0x3] }
  0x43   : > { %v1070_v17 = vrot.slane %v889_v5, 6  ;;  %v1072_v18 = vrot.slane %v890_v6, 5  ;;  %v1074_v21 = vrot.slane %v891_v9, 4  ;;  %v1076_v22 = vrot.slane %v892_v10, 3  ;;  %v303_v9 = vld [vmem:[%s3317_s9 + $0xa0] sm:$0x3] }
  0x44   : > { %v1078_v23 = vrot.slane %v893_v11, 2  ;;  %v1080_v24 = vrot.slane %v894_v12, 1  ;;  %v1069_v28 = vsel %vm1020_vm3, %v1068_v16, %v887_v3  ;;  %v432_v29 = vrot.slane %v256_v7, 1 }
  0x45   : > { %v3397_v26 = vld [vmem:[#allocation2 + $0x22] sm:$0xff]  ;;  %v433_v30 = vrot.slane %v257_v8, 1  ;;  %v434_v31 = vrot.slane %v258_v13, 1  ;;  %v1071_v32 = vsel %vm1023_vm4, %v1070_v17, %v1069_v28  ;;  %v435_v34 = vrot.slane %v259_v14, 1  ;;  %v309_v28 = vld [vmem:[%s3317_s9 + $0xac] sm:$0x3] }
  0x46   : > { %v3399_v27 = vld [vmem:[#allocation2 + $0x21] sm:$0xff]  ;;  %1328 = vrot.lane.b32.xlu1 %v3397_v26, %s3184_s10  ;;  %v436_v35 = vrot.slane %v260_v15, 1  ;;  %v437_v36 = vrot.slane %v261_v19, 1  ;;  %v1073_v37 = vsel %vm1026_vm5, %v1072_v18, %v1071_v32  ;;  %v438_v40 = vrot.slane %v262_v25, 1 }
  0x47   : > { %1296 = vrot.lane.b32.xlu0 %v3399_v27, %s3185_s11  ;;  %v559_v41 = vmax.f32 %v255_v2, %v431_v20  ;;  %v560_v42 = vmax.f32 %v256_v7, %v432_v29  ;;  %v1075_v43 = vsel %vm1029_vm6, %v1074_v21, %v1073_v37  ;;  %v561_v47 = vmax.f32 %v257_v8, %v433_v30  ;;  %v306_v20 = vld [vmem:[%s3317_s9 + $0xa6] sm:$0x3]  ;;  %v307_v21 = vld [vmem:[%s3317_s9 + $0xa8] sm:$0x3] }
  0x48   : > { %v562_v48 = vmax.f32 %v258_v13, %v434_v31  ;;  %v563_v49 = vmax.f32 %v259_v14, %v435_v34  ;;  %v1077_v50 = vsel %vm1032_vm7, %v1076_v22, %v1075_v43  ;;  %v564_v53 = vmax.f32 %v260_v15, %v436_v35  ;;  %v304_v14 = vld [vmem:[%s3317_s9 + $0xa2] sm:$0x3]  ;;  %v310_v34 = vld [vmem:[%s3317_s9 + $0xae] sm:$0x3] }
  0x49   : > { %v565_v54 = vmax.f32 %v261_v19, %v437_v36  ;;  %v566_v55 = vmax.f32 %v262_v25, %v438_v40  ;;  %v1079_v56 = vsel %vm1035_vm8, %v1078_v23, %v1077_v50  ;;  %v687_v57 = vrot.slane %v263_v33, 1  ;;  %v305_v19 = vld [vmem:[%s3317_s9 + $0xa4] sm:$0x3]  ;;  %v308_v25 = vld [vmem:[%s3317_s9 + $0xaa] sm:$0x3] }
  0x4a   : > { %v688_v58 = vrot.slane %v264_v38, 1  ;;  %v689_v59 = vrot.slane %v265_v39, 1  ;;  %v1081_v60 = vsel %vm1038_vm9, %v1080_v24, %v1079_v56  ;;  %v690_v61 = vrot.slane %v266_v44, 1 }
  0x4b   : > { %v691_v62 = vrot.slane %v267_v45, 1  ;;  %v692_v63 = vrot.slane %v268_v46, 1  ;;  %1150 = vst.msk [vmem:[#allocation2 + $0x41] sm:$0xff] %vm927_vm0, %v1081_v60  ;;  %v693_v1 = vrot.slane %v269_v51, 1  ;;  %v694_v2 = vrot.slane %v270_v52, 1 }
  0x4c   : > { %v815_v3 = vmax.f32 %v263_v33, %v687_v57  ;;  %v816_v4 = vmax.f32 %v264_v38, %v688_v58  ;;  %v817_v5 = vmax.f32 %v265_v39, %v689_v59  ;;  %v818_v6 = vmax.f32 %v266_v44, %v690_v61  ;;  %v311_v38 = vld [vmem:[%s3317_s9 + $0xb0] sm:$0x3]  ;;  %v316_v59 = vld [vmem:[%s3317_s9 + $0xba] sm:$0x3]  ;;  %v317_v60 = vld [vmem:[%s3317_s9 + $0xbc] sm:$0x3] }
  0x4d   : > { %v819_v7 = vmax.f32 %v267_v45, %v691_v62  ;;  %v820_v8 = vmax.f32 %v268_v46, %v692_v63  ;;  %v821_v10 = vmax.f32 %v269_v51, %v693_v1  ;;  %v822_v11 = vmax.f32 %v270_v52, %v694_v2  ;;  %v318_v61 = vld [vmem:[%s3317_s9 + $0xbe] sm:$0x3] }
  0x4e   : > { %v879_v12 = vmax.f32 %v559_v41, %v815_v3  ;;  %v880_v13 = vmax.f32 %v560_v42, %v816_v4  ;;  %v881_v15 = vmax.f32 %v561_v47, %v817_v5  ;;  %v882_v16 = vmax.f32 %v562_v48, %v818_v6  ;;  %v312_v42 = vld [vmem:[%s3317_s9 + $0xb2] sm:$0x3]  ;;  %v313_v47 = vld [vmem:[%s3317_s9 + $0xb4] sm:$0x3] }
  0x4f   : > { %v883_v17 = vmax.f32 %v563_v49, %v819_v7  ;;  %v884_v18 = vmax.f32 %v564_v53, %v820_v8  ;;  %v885_v22 = vmax.f32 %v565_v54, %v821_v10  ;;  %v886_v23 = vmax.f32 %v566_v55, %v822_v11  ;;  %v314_v53 = vld [vmem:[%s3317_s9 + $0xb6] sm:$0x3]  ;;  %v315_v54 = vld [vmem:[%s3317_s9 + $0xb8] sm:$0x3] }
  0x50   : > { %v1054_v24 = vrot.slane %v880_v13, 7  ;;  %v455_v29 = vrot.slane %v303_v9, 1  ;;  %v1056_v30 = vrot.slane %v881_v15, 6  ;;  %v1058_v31 = vrot.slane %v882_v16, 5 }
  0x51   : > { %v1060_v32 = vrot.slane %v883_v17, 4  ;;  %v1062_v33 = vrot.slane %v884_v18, 3  ;;  %v1064_v36 = vrot.slane %v885_v22, 2  ;;  %v1066_v37 = vrot.slane %v886_v23, 1  ;;  %v287_v22 = vld [vmem:[%s3317_s9 + $0x80] sm:$0x3] }
  0x52   : > { %v1055_v35 = vsel %vm1020_vm3, %v1054_v24, %v879_v12  ;;  %v456_v39 = vrot.slane %v304_v14, 1  ;;  %v3431_v40 = vld [vmem:[#allocation2 + $0x41] sm:$0xff]  ;;  %v457_v43 = vrot.slane %v305_v19, 1  ;;  %v458_v44 = vrot.slane %v306_v20, 1 }
  0x53   : > { %v1057_v41 = vsel %vm1023_vm4, %v1056_v30, %v1055_v35  ;;  %v459_v45 = vrot.slane %v307_v21, 1  ;;  %1300 = vrot.lane.b32.xlu1 %v3431_v40, %s3185_s11  ;;  %v460_v48 = vrot.slane %v308_v25, 1  ;;  %v461_v49 = vrot.slane %v309_v28, 1  ;;  %v3440_v52 = vld [vmem:[#allocation2 + $0x42] sm:$0xff] }
  0x54   : > { %v1059_v46 = vsel %vm1026_vm5, %v1058_v31, %v1057_v41  ;;  %v462_v50 = vrot.slane %v310_v34, 1  ;;  %v583_v55 = vmax.f32 %v303_v9, %v455_v29  ;;  %v584_v56 = vmax.f32 %v304_v14, %v456_v39  ;;  %v288_v29 = vld [vmem:[%s3317_s9 + $0x82] sm:$0x3]  ;;  %v289_v30 = vld [vmem:[%s3317_s9 + $0x84] sm:$0x3] }
  0x55   : > { %v1061_v51 = vsel %vm1029_vm6, %v1060_v32, %v1059_v46  ;;  %v585_v57 = vmax.f32 %v305_v19, %v457_v43  ;;  %v586_v62 = vmax.f32 %v306_v20, %v458_v44  ;;  %v587_v63 = vmax.f32 %v307_v21, %v459_v45  ;;  %v290_v35 = vld [vmem:[%s3317_s9 + $0x86] sm:$0x3] }
  0x56   : > { %v1063_v58 = vsel %vm1032_vm7, %v1062_v33, %v1061_v51  ;;  %v588_v1 = vmax.f32 %v308_v25, %v460_v48  ;;  %v589_v3 = vmax.f32 %v309_v28, %v461_v49  ;;  %v590_v4 = vmax.f32 %v310_v34, %v462_v50  ;;  %v294_v48 = vld [vmem:[%s3317_s9 + $0x8e] sm:$0x3] }
  0x57   : > { %v1065_v2 = vsel %vm1035_vm8, %v1064_v36, %v1063_v58  ;;  %v711_v5 = vrot.slane %v311_v38, 1  ;;  %1332 = vrot.lane.b32.xlu1 %v3440_v52, %s3184_s10  ;;  %v712_v7 = vrot.slane %v312_v42, 1  ;;  %v713_v8 = vrot.slane %v313_v47, 1  ;;  %v291_v36 = vld [vmem:[%s3317_s9 + $0x88] sm:$0x3] }
  0x58   : > { %v1067_v6 = vsel %vm1038_vm9, %v1066_v37, %v1065_v2  ;;  %v714_v9 = vrot.slane %v314_v53, 1  ;;  %v715_v10 = vrot.slane %v315_v54, 1  ;;  %v716_v11 = vrot.slane %v316_v59, 1  ;;  %v292_v37 = vld [vmem:[%s3317_s9 + $0x8a] sm:$0x3] }
  0x59   : > { %1149 = vst.msk [vmem:[#allocation2 + $0x31] sm:$0xff] %vm927_vm0, %v1067_v6  ;;  %v717_v12 = vrot.slane %v317_v60, 1  ;;  %v718_v13 = vrot.slane %v318_v61, 1  ;;  %v839_v14 = vmax.f32 %v311_v38, %v711_v5  ;;  %v840_v15 = vmax.f32 %v312_v42, %v712_v7  ;;  %v293_v42 = vld [vmem:[%s3317_s9 + $0x8c] sm:$0x3] }
  0x5a   : > { %v841_v16 = vmax.f32 %v313_v47, %v713_v8  ;;  %v842_v17 = vmax.f32 %v314_v53, %v714_v9  ;;  %v843_v18 = vmax.f32 %v315_v54, %v715_v10  ;;  %v844_v19 = vmax.f32 %v316_v59, %v716_v11  ;;  %v298_v5 = vld [vmem:[%s3317_s9 + $0x96] sm:$0x3]  ;;  %v299_v6 = vld [vmem:[%s3317_s9 + $0x98] sm:$0x3]  ;;  %v300_v7 = vld [vmem:[%s3317_s9 + $0x9a] sm:$0x3] }
  0x5b   : > { %v845_v20 = vmax.f32 %v317_v60, %v717_v12  ;;  %v846_v21 = vmax.f32 %v318_v61, %v718_v13  ;;  %v903_v23 = vmax.f32 %v583_v55, %v839_v14  ;;  %v904_v24 = vmax.f32 %v584_v56, %v840_v15  ;;  %v295_v56 = vld [vmem:[%s3317_s9 + $0x90] sm:$0x3]  ;;  %v301_v12 = vld [vmem:[%s3317_s9 + $0x9c] sm:$0x3]  ;;  %v302_v13 = vld [vmem:[%s3317_s9 + $0x9e] sm:$0x3] }
  0x5c   : > { %v905_v25 = vmax.f32 %v585_v57, %v841_v16  ;;  %v906_v28 = vmax.f32 %v586_v62, %v842_v17  ;;  %v907_v31 = vmax.f32 %v587_v63, %v843_v18  ;;  %v908_v32 = vmax.f32 %v588_v1, %v844_v19  ;;  %v296_v62 = vld [vmem:[%s3317_s9 + $0x92] sm:$0x3]  ;;  %v297_v63 = vld [vmem:[%s3317_s9 + $0x94] sm:$0x3] }
  0x5d   : > { %v909_v33 = vmax.f32 %v589_v3, %v845_v20  ;;  %v910_v34 = vmax.f32 %v590_v4, %v846_v21  ;;  %v1096_v38 = vrot.slane %v904_v24, 7  ;;  %v447_v43 = vrot.slane %v287_v22, 1 }
  0x5e   : > { %v1098_v39 = vrot.slane %v905_v25, 6  ;;  %v1100_v41 = vrot.slane %v906_v28, 5  ;;  %v1102_v44 = vrot.slane %v907_v31, 4  ;;  %v1104_v45 = vrot.slane %v908_v32, 3 }
  0x5f   : > { %v1106_v46 = vrot.slane %v909_v33, 2  ;;  %v1108_v47 = vrot.slane %v910_v34, 1  ;;  %v1097_v50 = vsel %vm1020_vm3, %v1096_v38, %v903_v23  ;;  %v448_v51 = vrot.slane %v288_v29, 1 }
  0x60   : > { %v3461_v49 = vld [vmem:[#allocation2 + $0x31] sm:$0xff]  ;;  %v449_v53 = vrot.slane %v289_v30, 1  ;;  %v450_v54 = vrot.slane %v290_v35, 1  ;;  %v1099_v55 = vsel %vm1023_vm4, %v1098_v39, %v1097_v50  ;;  %v451_v57 = vrot.slane %v291_v36, 1 }
  0x61   : > { %1298 = vrot.lane.b32.xlu0 %v3461_v49, %s3185_s11  ;;  %v452_v58 = vrot.slane %v292_v37, 1  ;;  %v453_v59 = vrot.slane %v293_v42, 1  ;;  %v3468_v60 = vld [vmem:[#allocation2 + $0x32] sm:$0xff]  ;;  %v1101_v61 = vsel %vm1026_vm5, %v1100_v41, %v1099_v55  ;;  %v454_v1 = vrot.slane %v294_v48, 1  ;;  %v336_v41 = vld [vmem:[%s3317_s9 + $0xe2] sm:$0x3] }
  0x62   : > { %v575_v2 = vmax.f32 %v287_v22, %v447_v43  ;;  %v576_v3 = vmax.f32 %v288_v29, %v448_v51  ;;  %v1103_v4 = vsel %vm1029_vm6, %v1102_v44, %v1101_v61  ;;  %v577_v8 = vmax.f32 %v289_v30, %v449_v53  ;;  %v341_v55 = vld [vmem:[%s3317_s9 + $0xec] sm:$0x3] }
  0x63   : > { %v578_v9 = vmax.f32 %v290_v35, %v450_v54  ;;  %v579_v10 = vmax.f32 %v291_v36, %v451_v57  ;;  %v1105_v11 = vsel %vm1032_vm7, %v1104_v45, %v1103_v4  ;;  %v580_v14 = vmax.f32 %v292_v37, %v452_v58  ;;  %v335_v35 = vld [vmem:[%s3317_s9 + $0xe0] sm:$0x3]  ;;  %v340_v54 = vld [vmem:[%s3317_s9 + $0xea] sm:$0x3] }
  0x64   : > { %v581_v15 = vmax.f32 %v293_v42, %v453_v59  ;;  %v582_v16 = vmax.f32 %v294_v48, %v454_v1  ;;  %v1107_v17 = vsel %vm1035_vm8, %v1106_v46, %v1105_v11  ;;  %v703_v18 = vrot.slane %v295_v56, 1  ;;  %v337_v46 = vld [vmem:[%s3317_s9 + $0xe4] sm:$0x3]  ;;  %v339_v48 = vld [vmem:[%s3317_s9 + $0xe8] sm:$0x3] }
  0x65   : > { %1330 = vrot.lane.b32.xlu0 %v3468_v60, %s3184_s10  ;;  %v704_v19 = vrot.slane %v296_v62, 1  ;;  %v705_v20 = vrot.slane %v297_v63, 1  ;;  %v1109_v21 = vsel %vm1038_vm9, %v1108_v47, %v1107_v17  ;;  %v706_v22 = vrot.slane %v298_v5, 1  ;;  %v338_v47 = vld [vmem:[%s3317_s9 + $0xe6] sm:$0x3] }
  0x66   : > { %v707_v23 = vrot.slane %v299_v6, 1  ;;  %v708_v24 = vrot.slane %v300_v7, 1  ;;  %1152 = vst.msk [vmem:[#allocation2 + $0x61] sm:$0xff] %vm927_vm0, %v1109_v21  ;;  %v709_v25 = vrot.slane %v301_v12, 1  ;;  %v710_v28 = vrot.slane %v302_v13, 1 }
  0x67   : > { %v831_v29 = vmax.f32 %v295_v56, %v703_v18  ;;  %v832_v30 = vmax.f32 %v296_v62, %v704_v19  ;;  %v833_v31 = vmax.f32 %v297_v63, %v705_v20  ;;  %v834_v32 = vmax.f32 %v298_v5, %v706_v22  ;;  %v342_v62 = vld [vmem:[%s3317_s9 + $0xee] sm:$0x3]  ;;  %v346_v18 = vld [vmem:[%s3317_s9 + $0xf6] sm:$0x3]  ;;  %v347_v19 = vld [vmem:[%s3317_s9 + $0xf8] sm:$0x3] }
  0x68   : > { %v835_v33 = vmax.f32 %v299_v6, %v707_v23  ;;  %v836_v34 = vmax.f32 %v300_v7, %v708_v24  ;;  %v837_v36 = vmax.f32 %v301_v12, %v709_v25  ;;  %v838_v37 = vmax.f32 %v302_v13, %v710_v28  ;;  %v344_v7 = vld [vmem:[%s3317_s9 + $0xf2] sm:$0x3]  ;;  %v345_v12 = vld [vmem:[%s3317_s9 + $0xf4] sm:$0x3]  ;;  %v348_v24 = vld [vmem:[%s3317_s9 + $0xfa] sm:$0x3] }
  0x69   : > { %v895_v38 = vmax.f32 %v575_v2, %v831_v29  ;;  %v896_v39 = vmax.f32 %v576_v3, %v832_v30  ;;  %v897_v42 = vmax.f32 %v577_v8, %v833_v31  ;;  %v898_v43 = vmax.f32 %v578_v9, %v834_v32  ;;  %v343_v3 = vld [vmem:[%s3317_s9 + $0xf0] sm:$0x3]  ;;  %v349_v25 = vld [vmem:[%s3317_s9 + $0xfc] sm:$0x3]  ;;  %v350_v28 = vld [vmem:[%s3317_s9 + $0xfe] sm:$0x3] }
  0x6a   : > { %v899_v44 = vmax.f32 %v579_v10, %v835_v33  ;;  %v900_v45 = vmax.f32 %v580_v14, %v836_v34  ;;  %v901_v50 = vmax.f32 %v581_v15, %v837_v36  ;;  %v902_v51 = vmax.f32 %v582_v16, %v838_v37 }
  0x6b   : > { %v1082_v53 = vrot.slane %v896_v39, 7  ;;  %v471_v56 = vrot.slane %v335_v35, 1  ;;  %v1084_v57 = vrot.slane %v897_v42, 6  ;;  %v1086_v58 = vrot.slane %v898_v43, 5 }
  0x6c   : > { %v1088_v59 = vrot.slane %v899_v44, 4  ;;  %v1090_v61 = vrot.slane %v900_v45, 3  ;;  %v1092_v1 = vrot.slane %v901_v50, 2  ;;  %v1094_v2 = vrot.slane %v902_v51, 1 }
  0x6d   : > { %v1083_v63 = vsel %vm1020_vm3, %v1082_v53, %v895_v38  ;;  %v472_v4 = vrot.slane %v336_v41, 1  ;;  %v3495_v5 = vld [vmem:[#allocation2 + $0x61] sm:$0xff]  ;;  %v473_v8 = vrot.slane %v337_v46, 1  ;;  %v474_v9 = vrot.slane %v338_v47, 1 }
  0x6e   : > { %v1085_v6 = vsel %vm1023_vm4, %v1084_v57, %v1083_v63  ;;  %v475_v10 = vrot.slane %v339_v48, 1  ;;  %1304 = vrot.lane.b32.xlu1 %v3495_v5, %s3185_s11  ;;  %v476_v13 = vrot.slane %v340_v54, 1  ;;  %v477_v14 = vrot.slane %v341_v55, 1  ;;  %v3504_v17 = vld [vmem:[#allocation2 + $0x62] sm:$0xff] }
  0x6f   : > { %v1087_v11 = vsel %vm1026_vm5, %v1086_v58, %v1085_v6  ;;  %v478_v15 = vrot.slane %v342_v62, 1  ;;  %v599_v20 = vmax.f32 %v335_v35, %v471_v56  ;;  %v600_v21 = vmax.f32 %v336_v41, %v472_v4  ;;  %v322_v4 = vld [vmem:[%s3317_s9 + $0xc6] sm:$0x3]  ;;  %v323_v6 = vld [vmem:[%s3317_s9 + $0xc8] sm:$0x3] }
  0x70   : > { %v1089_v16 = vsel %vm1029_vm6, %v1088_v59, %v1087_v11  ;;  %v601_v22 = vmax.f32 %v337_v46, %v473_v8  ;;  %v602_v29 = vmax.f32 %v338_v47, %v474_v9  ;;  %v603_v30 = vmax.f32 %v339_v48, %v475_v10  ;;  %v325_v11 = vld [vmem:[%s3317_s9 + $0xcc] sm:$0x3] }
  0x71   : > { %v1091_v23 = vsel %vm1032_vm7, %v1090_v61, %v1089_v16  ;;  %v604_v31 = vmax.f32 %v340_v54, %v476_v13  ;;  %v605_v33 = vmax.f32 %v341_v55, %v477_v14  ;;  %v606_v34 = vmax.f32 %v342_v62, %v478_v15  ;;  %v319_v55 = vld [vmem:[%s3317_s9 + $0xc0] sm:$0x3]  ;;  %v320_v61 = vld [vmem:[%s3317_s9 + $0xc2] sm:$0x3]  ;;  %v321_v62 = vld [vmem:[%s3317_s9 + $0xc4] sm:$0x3] }
  0x72   : > { %v1093_v32 = vsel %vm1035_vm8, %v1092_v1, %v1091_v23  ;;  %v727_v36 = vrot.slane %v343_v3, 1  ;;  %1336 = vrot.lane.b32.xlu1 %v3504_v17, %s3184_s10  ;;  %v728_v35 = vrot.slane %v344_v7, 1  ;;  %v729_v38 = vrot.slane %v345_v12, 1 }
  0x73   : > { %v1095_v37 = vsel %vm1038_vm9, %v1094_v2, %v1093_v32  ;;  %v730_v39 = vrot.slane %v346_v18, 1  ;;  %v731_v41 = vrot.slane %v347_v19, 1  ;;  %v732_v42 = vrot.slane %v348_v24, 1 }
  0x74   : > { %1151 = vst.msk [vmem:[#allocation2 + $0x51] sm:$0xff] %vm927_vm0, %v1095_v37  ;;  %v733_v43 = vrot.slane %v349_v25, 1  ;;  %v734_v44 = vrot.slane %v350_v28, 1  ;;  %v855_v45 = vmax.f32 %v343_v3, %v727_v36  ;;  %v856_v46 = vmax.f32 %v344_v7, %v728_v35  ;;  %v324_v7 = vld [vmem:[%s3317_s9 + $0xca] sm:$0x3] }
  0x75   : > { %v857_v47 = vmax.f32 %v345_v12, %v729_v38  ;;  %v858_v48 = vmax.f32 %v346_v18, %v730_v39  ;;  %v859_v50 = vmax.f32 %v347_v19, %v731_v41  ;;  %v860_v51 = vmax.f32 %v348_v24, %v732_v42  ;;  %v326_v18 = vld [vmem:[%s3317_s9 + $0xce] sm:$0x3]  ;;  %v330_v39 = vld [vmem:[%s3317_s9 + $0xd6] sm:$0x3]  ;;  %v331_v41 = vld [vmem:[%s3317_s9 + $0xd8] sm:$0x3] }
  0x76   : > { %v861_v53 = vmax.f32 %v349_v25, %v733_v43  ;;  %v862_v54 = vmax.f32 %v350_v28, %v734_v44  ;;  %v919_v56 = vmax.f32 %v599_v20, %v855_v45  ;;  %v920_v57 = vmax.f32 %v600_v21, %v856_v46  ;;  %v327_v25 = vld [vmem:[%s3317_s9 + $0xd0] sm:$0x3]  ;;  %v332_v42 = vld [vmem:[%s3317_s9 + $0xda] sm:$0x3] }
  0x77   : > { %v921_v58 = vmax.f32 %v601_v22, %v857_v47  ;;  %v922_v59 = vmax.f32 %v602_v29, %v858_v48  ;;  %v923_v63 = vmax.f32 %v603_v30, %v859_v50  ;;  %v924_v1 = vmax.f32 %v604_v31, %v860_v51  ;;  %v333_v47 = vld [vmem:[%s3317_s9 + $0xdc] sm:$0x3]  ;;  %v334_v48 = vld [vmem:[%s3317_s9 + $0xde] sm:$0x3] }
  0x78   : > { %v925_v2 = vmax.f32 %v605_v33, %v861_v53  ;;  %v926_v3 = vmax.f32 %v606_v34, %v862_v54  ;;  %v1124_v8 = vrot.slane %v920_v57, 7  ;;  %v463_v12 = vrot.slane %v319_v55, 1  ;;  %v328_v33 = vld [vmem:[%s3317_s9 + $0xd2] sm:$0x3]  ;;  %v329_v34 = vld [vmem:[%s3317_s9 + $0xd4] sm:$0x3] }
  0x79   : > { %v1126_v9 = vrot.slane %v921_v58, 6  ;;  %v1128_v10 = vrot.slane %v922_v59, 5  ;;  %v1130_v13 = vrot.slane %v923_v63, 4  ;;  %v1132_v14 = vrot.slane %v924_v1, 3  ;;  %s3119_s9 = scalar_lea.vmem %s4052_s30, 1024 }
  0x7a   : > { %v1134_v15 = vrot.slane %v925_v2, 2  ;;  %v1136_v16 = vrot.slane %v926_v3, 1  ;;  %v1125_v20 = vsel %vm1020_vm3, %v1124_v8, %v919_v56  ;;  %v464_v21 = vrot.slane %v320_v61, 1  ;;  %p3120_p11 = scmp.ne.s32.totalorder %s4052_s30, %s3119_s9 }
  0x7b   : > { %v3525_v19 = vld [vmem:[#allocation2 + $0x51] sm:$0xff]  ;;  %v465_v22 = vrot.slane %v321_v62, 1  ;;  %v466_v23 = vrot.slane %v322_v4, 1  ;;  %v1127_v24 = vsel %vm1023_vm4, %v1126_v9, %v1125_v20  ;;  %v467_v28 = vrot.slane %v323_v6, 1 }
  0x7c   : > { %1302 = vrot.lane.b32.xlu0 %v3525_v19, %s3185_s11  ;;  %v468_v29 = vrot.slane %v324_v7, 1  ;;  %v469_v30 = vrot.slane %v325_v11, 1  ;;  %v3532_v31 = vld [vmem:[#allocation2 + $0x52] sm:$0xff]  ;;  %v1129_v32 = vsel %vm1026_vm5, %v1128_v10, %v1127_v24  ;;  %v470_v36 = vrot.slane %v326_v18, 1  ;;  %p3121_p12 = pnand %p3120_p11, %p3258_p5 }
  0x7d   : > { %v591_v37 = vmax.f32 %v319_v55, %v463_v12  ;;  %v592_v35 = vmax.f32 %v320_v61, %v464_v21  ;;  %v1131_v38 = vsel %vm1029_vm6, %v1130_v13, %v1129_v32  ;;  %v593_v43 = vmax.f32 %v321_v62, %v465_v22  ;;  %v2778_v20 = vld [vmem:[%s4099_s1 + $0x18] sm:$0xf] }
  0x7e   : > { %v594_v44 = vmax.f32 %v322_v4, %v466_v23  ;;  %v595_v45 = vmax.f32 %v323_v6, %v467_v28  ;;  %v1133_v46 = vsel %vm1032_vm7, %v1132_v14, %v1131_v38  ;;  %v596_v50 = vmax.f32 %v324_v7, %v468_v29  ;;  %p3122_p13 = pneg %p3121_p12 }
  0x7f   : > { %v597_v51 = vmax.f32 %v325_v11, %v469_v30  ;;  %v598_v53 = vmax.f32 %v326_v18, %v470_v36  ;;  %v1135_v54 = vsel %vm1035_vm8, %v1134_v15, %v1133_v46  ;;  %v719_v55 = vrot.slane %v327_v25, 1  ;;  %v2777_v18 = vld [vmem:[%s4099_s1 + $0x10] sm:$0xff]  ;;  %v1260_v46 = vld [vmem:[%s4099_s1] sm:$0xff] }
  0x80   : > { %1334 = vrot.lane.b32.xlu0 %v3532_v31, %s3184_s10  ;;  %v720_v56 = vrot.slane %v328_v33, 1  ;;  %v721_v57 = vrot.slane %v329_v34, 1  ;;  %v1137_v58 = vsel %vm1038_vm9, %v1136_v16, %v1135_v54  ;;  %v722_v59 = vrot.slane %v330_v39, 1  ;;  %v1163_v54 = vld [vmem:[#allocation2 + $0x1] sm:$0xff] }
  0x81   : > { %v723_v61 = vrot.slane %v331_v41, 1  ;;  %v724_v62 = vrot.slane %v332_v42, 1  ;;  %1154 = vst.msk [vmem:[#allocation2 + $0x81] sm:$0xff] %vm927_vm0, %v1137_v58  ;;  %v725_v63 = vrot.slane %v333_v47, 1  ;;  %v726_v1 = vrot.slane %v334_v48, 1 }
  0x82   : > { %v847_v2 = vmax.f32 %v327_v25, %v719_v55  ;;  %v848_v3 = vmax.f32 %v328_v33, %v720_v56  ;;  %v849_v4 = vmax.f32 %v329_v34, %v721_v57  ;;  %v850_v6 = vmax.f32 %v330_v39, %v722_v59  ;;  %v1171_v55 = vld [vmem:[#allocation2 + $0x2] sm:$0xff]  ;;  %v3607_v56 = vld [vmem:[#allocation2 + $0x10] sm:$0xff] }
  0x83   : > { %v851_v7 = vmax.f32 %v331_v41, %v723_v61  ;;  %v852_v8 = vmax.f32 %v332_v42, %v724_v62  ;;  %v853_v9 = vmax.f32 %v333_v47, %v725_v63  ;;  %v854_v10 = vmax.f32 %v334_v48, %v726_v1  ;;  %v1261_v47 = vld [vmem:[%s4099_s1 + $0x8] sm:$0xf]  ;;  %v3625_v62 = vld [vmem:[#allocation2 + $0x20] sm:$0xff] }
  0x84   : > { %v911_v11 = vmax.f32 %v591_v37, %v847_v2  ;;  %v912_v12 = vmax.f32 %v592_v35, %v848_v3  ;;  %v913_v13 = vmax.f32 %v593_v43, %v849_v4  ;;  %v914_v14 = vmax.f32 %v594_v44, %v850_v6  ;;  %v2797_v63 = vld [vmem:[%s4099_s1 + $0x20] sm:$0xff]  ;;  %v2798_v1 = vld [vmem:[%s4099_s1 + $0x28] sm:$0xf] }
  0x85   : > { %v915_v15 = vmax.f32 %v595_v45, %v851_v7  ;;  %v916_v16 = vmax.f32 %v596_v50, %v852_v8  ;;  %v917_v21 = vmax.f32 %v597_v51, %v853_v9  ;;  %v918_v22 = vmax.f32 %v598_v53, %v854_v10  ;;  %v1164_v45 = vld [vmem:[#allocation2 + $0x11] sm:$0xff] }
  0x86   : > { %v1110_v23 = vrot.slane %v912_v12, 7  ;;  %v1112_v24 = vrot.slane %v913_v13, 6  ;;  %v1114_v25 = vrot.slane %v914_v14, 5  ;;  %v3012_v32 = vpack.c.bf16 %v2778_v20, %v2777_v18  ;;  %v1172_v50 = vld [vmem:[#allocation2 + $0x12] sm:$0xff] }
  0x87   : > { %v1116_v28 = vrot.slane %v915_v15, 4  ;;  %v1118_v30 = vrot.slane %v916_v16, 3  ;;  %v1120_v36 = vrot.slane %v917_v21, 2  ;;  %v1122_v35 = vrot.slane %v918_v22, 1  ;;  %v3686_v13 = vld [vmem:[#allocation2 + $0x50] sm:$0xff] }
  0x88   : > { %v1111_v29 = vsel %vm1020_vm3, %v1110_v23, %v911_v11  ;;  %v3556_v33 = vld [vmem:[#allocation2 + $0x81] sm:$0xff]  ;;  %3014 = vmatprep.subr.msk.bf16.mxu0 %vm3562_vm13, %v3012_v32  ;;  %v3018_v48 = vpack.c.bf16 %v1261_v47, %v1260_v46  ;;  %v3637_v4 = vpack.c.bf16 %v2798_v1, %v2797_v63  ;;  %vm1912_vm1 = vcmask 57344  }
  0x89   : > { %v1113_v34 = vsel %vm1023_vm4, %v1112_v24, %v1111_v29  ;;  %1308 = vrot.lane.b32.xlu1 %v3556_v33, %s3185_s11  ;;  %v3571_v41 = vld [vmem:[#allocation2 + $0x82] sm:$0xff]  ;;  %3017 = vmatpush3.bf16.msk.msra.mxu0 %vm3562_vm13, %v3012_v32  ;;  %1923 = vst.msk [vmem:[#allocation3 + $0x9] sm:$0x1] %vm1912_vm1, %v3183_v0  ;;  %1913 = vst.msk [vmem:[#allocation3] sm:$0x1] %vm1912_vm1, %v3183_v0 }
  0x8a   : > { %v1115_v37 = vsel %vm1026_vm5, %v1114_v25, %v1113_v34  ;;  %3020 = vmatprep.subr.msk.bf16.mxu0 %vm3562_vm13, %v3018_v48  ;;  %v3684_v11 = vld [vmem:[#allocation2 + $0x60] sm:$0xff]  ;;  %1914 = vst.msk [vmem:[#allocation3 + $0x10] sm:$0x1] %vm1912_vm1, %v3183_v0  ;;  %1915 = vst.msk [vmem:[#allocation3 + $0x20] sm:$0x1] %vm1912_vm1, %v3183_v0 }
  0x8b   : > { %v1117_v39 = vsel %vm1029_vm6, %v1116_v28, %v1115_v37  ;;  %v3696_v28 = vld [vmem:[#allocation2 + $0x80] sm:$0xff]  ;;  %1916 = vst.msk [vmem:[#allocation3 + $0x30] sm:$0x1] %vm1912_vm1, %v3183_v0  ;;  %1917 = vst.msk [vmem:[#allocation3 + $0x40] sm:$0x1] %vm1912_vm1, %v3183_v0 }
  0x8c   : > { %v1119_v42 = vsel %vm1032_vm7, %v1118_v30, %v1117_v39  ;;  %1918 = vst.msk [vmem:[#allocation3 + $0x50] sm:$0x1] %vm1912_vm1, %v3183_v0  ;;  %1919 = vst.msk [vmem:[#allocation3 + $0x60] sm:$0x1] %vm1912_vm1, %v3183_v0 }
  0x8d   : > { %v1121_v43 = vsel %vm1035_vm8, %v1120_v36, %v1119_v42  ;;  %1340 = vrot.lane.b32.xlu1 %v3571_v41, %s3184_s10  ;;  %v1155_v42 = vld [vmem:[#allocation2] sm:$0xff]  ;;  %1920 = vst.msk [vmem:[#allocation3 + $0x70] sm:$0x1] %vm1912_vm1, %v3183_v0  ;;  %1921 = vst.msk [vmem:[#allocation3 + $0x80] sm:$0x1] %vm1912_vm1, %v3183_v0 }
  0x8e   : > { %v1123_v44 = vsel %vm1038_vm9, %v1122_v35, %v1121_v43  ;;  %1922 = vst.msk [vmem:[#allocation3 + $0x90] sm:$0x1] %vm1912_vm1, %v3183_v0  ;;  %1924 = vst.msk [vmem:[#allocation3 + $0x19] sm:$0x1] %vm1912_vm1, %v3183_v0 }
  0x8f   : > { %1153 = vst.msk [vmem:[#allocation2 + $0x71] sm:$0xff] %vm927_vm0, %v1123_v44 }
  0x90   : > { %1925 = vst.msk [vmem:[#allocation3 + $0x29] sm:$0x1] %vm1912_vm1, %v3183_v0  ;;  %1926 = vst.msk [vmem:[#allocation3 + $0x39] sm:$0x1] %vm1912_vm1, %v3183_v0 }
  0x91   : > { %1189 = vrot.lane.b32.xlu1 %v1164_v45, %s3185_s11  ;;  %1927 = vst.msk [vmem:[#allocation3 + $0x49] sm:$0x1] %vm1912_vm1, %v3183_v0  ;;  %1928 = vst.msk [vmem:[#allocation3 + $0x59] sm:$0x1] %vm1912_vm1, %v3183_v0 }
  0x92   : > { %1929 = vst.msk [vmem:[#allocation3 + $0x69] sm:$0x1] %vm1912_vm1, %v3183_v0  ;;  %1930 = vst.msk [vmem:[#allocation3 + $0x79] sm:$0x1] %vm1912_vm1, %v3183_v0 }
  0x93   : > { %1931 = vst.msk [vmem:[#allocation3 + $0x89] sm:$0x1] %vm1912_vm1, %v3183_v0  ;;  %1932 = vst.msk [vmem:[#allocation3 + $0x99] sm:$0x1] %vm1912_vm1, %v3183_v0  ;;  %v2809_v0 = vld [vmem:[%s4101_s3 + $0x18] sm:$0xff] }
  0x95   : > { %1221 = vrot.lane.b32.xlu1 %v1172_v50, %s3184_s10 }
  0x96   : > { %v1276_v51 = vld [vmem:[#allocation2 + $0x71] sm:$0xff] }
  0x97   : > { %1306 = vrot.lane.b32.xlu0 %v1276_v51, %s3185_s11  ;;  %v1284_v53 = vld [vmem:[#allocation2 + $0x72] sm:$0xff] }
  0x98   : > { %v3698_v30 = vld [vmem:[#allocation2 + $0x70] sm:$0xff] }
  0x99   : > { %1193 = vrot.lane.b32.xlu1 %v3461_v49, %s3185_s11 }
  0x9b   : > { %1338 = vrot.lane.b32.xlu0 %v1284_v53, %s3184_s10 }
  0x9d   : > { %1225 = vrot.lane.b32.xlu1 %v3468_v60, %s3184_s10 }
  0x9f   : > { %1187 = vrot.lane.b32.xlu0 %v1163_v54, %s3185_s11 }
  0xa1   : > { %1197 = vrot.lane.b32.xlu1 %v3525_v19, %s3185_s11 }
  0xa3   : > { %1219 = vrot.lane.b32.xlu0 %v1171_v55, %s3184_s10 }
  0xa5   : > { %1229 = vrot.lane.b32.xlu1 %v3532_v31, %s3184_s10 }
  0xa7   : > { %1191 = vrot.lane.b32.xlu0 %v3399_v27, %s3185_s11 }
  0xa9   : > { %1201 = vrot.lane.b32.xlu1 %v1276_v51, %s3185_s11 }
  0xaa   : > { %v1327_v57 = vpop.permute.xlu1 %1326 }
  0xab   : > { %1223 = vrot.lane.b32.xlu0 %v3397_v26, %s3184_s10  ;;  %v1295_v58 = vpop.permute.xlu0 %1294 }
  0xac   : > { %v1350_v59 = vsel %vm927_vm0, %v3607_v56, %v1295_v58 }
  0xad   : > { %v1358_v61 = vsel %vm1251_vm11, %v1350_v59, %v1327_v57  ;;  %1233 = vrot.lane.b32.xlu1 %v1284_v53, %s3184_s10 }
  0xae   : > { %2914 = vmatprep.mubr.msk.f32.mxu0 %vm1369_vm14, %v1358_v61 }
  0xaf   : > { %1195 = vrot.lane.b32.xlu0 %v3431_v40, %s3185_s11 }
  0xb1   : > { %1670 = vrot.lane.b32.xlu1 %v3461_v49, %s3185_s11 }
  0xb3   : > { %1227 = vrot.lane.b32.xlu0 %v3440_v52, %s3184_s10 }
  0xb5   : > { %1702 = vrot.lane.b32.xlu1 %v3468_v60, %s3184_s10 }
  0xb7   : > { %1199 = vrot.lane.b32.xlu0 %v3495_v5, %s3185_s11 }
  0xb8   : > { %v1329_v49 = vpop.permute.xlu1 %1328 }
  0xb9   : > { %v1297_v2 = vpop.permute.xlu0 %1296  ;;  %1674 = vrot.lane.b32.xlu1 %v3525_v19, %s3185_s11  ;;  %v1651_v19 = vld [vmem:[#allocation2 + $0x91] sm:$0xff] }
  0xba   : > { %v1351_v3 = vsel %vm927_vm0, %v3625_v62, %v1297_v2 }
  0xbb   : > { %v1359_v60 = vsel %vm1251_vm11, %v1351_v3, %v1329_v49  ;;  %1231 = vrot.lane.b32.xlu0 %v3504_v17, %s3184_s10 }
  0xbc   : > { %2915 = vmatmul.mubr.msk.f32.vlgmr.msra.gmra.mrb[0].mxu0 %vm1369_vm14, %v1359_v60 }
  0xbd   : > { %3023 = vmatpush3.bf16.msk.msra.mxu0 %vm3562_vm13, %v3018_v48  ;;  %1706 = vrot.lane.b32.xlu1 %v3532_v31, %s3184_s10  ;;  %v1659_v31 = vld [vmem:[#allocation2 + $0x92] sm:$0xff] }
  0xbe   : > { %3026 = vmatprep.subr.msk.bf16.mxu0 %vm3562_vm13, %v3637_v4 }
  0xbf   : > { %1668 = vrot.lane.b32.xlu0 %v3399_v27, %s3185_s11 }
  0xc1   : > { %1678 = vrot.lane.b32.xlu1 %v1276_v51, %s3185_s11 }
  0xc3   : > { %1700 = vrot.lane.b32.xlu0 %v3397_v26, %s3184_s10  ;;  %v3668_v26 = vld [vmem:[#allocation2 + $0x40] sm:$0xff] }
  0xc5   : > { %1710 = vrot.lane.b32.xlu1 %v1284_v53, %s3184_s10  ;;  %v1301_v27 = vpop.permute.xlu1 %1300 }
  0xc6   : > { %v1353_v8 = vsel %vm927_vm0, %v3668_v26, %v1301_v27 }
  0xc7   : > { %1672 = vrot.lane.b32.xlu0 %v3431_v40, %s3185_s11  ;;  %v3670_v40 = vld [vmem:[#allocation2 + $0x30] sm:$0xff] }
  0xc9   : > { %1682 = vrot.lane.b32.xlu1 %v1651_v19, %s3185_s11  ;;  %v1333_v7 = vpop.permute.xlu1 %1332 }
  0xcb   : > { %1704 = vrot.lane.b32.xlu0 %v3440_v52, %s3184_s10 }
  0xcd   : > { %1714 = vrot.lane.b32.xlu1 %v1659_v31, %s3184_s10 }
  0xcf   : > { %1676 = vrot.lane.b32.xlu0 %v3495_v5, %s3185_s11  ;;  %v1361_v5 = vsel %vm1251_vm11, %v1353_v8, %v1333_v7 }
  0xd3   : > { %1708 = vrot.lane.b32.xlu0 %v3504_v17, %s3184_s10  ;;  %v1299_v6 = vpop.permute.xlu0 %1298 }
  0xd4   : > { %v1352_v52 = vsel %vm927_vm0, %v3670_v40, %v1299_v6 }
  0xd7   : > { %1680 = vrot.lane.b32.xlu0 %v3556_v33, %s3185_s11  ;;  %v1331_v9 = vpop.permute.xlu0 %1330  ;;  %s3188_s11 = smov [#allocation4]  }
  0xd8   : > { %v1360_v17 = vsel %vm1251_vm11, %v1352_v52, %v1331_v9  ;;  %s3123_s12 = sshll.u32 %s3188_s11, 4  ;;  %s3124_s12 = int_to_ptr.vmem [resolvable:$false] %s3123_s12 }
  0xd9   : > { %2917 = vmatprep.mubr.msk.f32.mxu0 %vm1369_vm14, %v1360_v17  ;;  %s3125_s13 = scalar_lea.vmem %s3124_s12, 2048  ;;  %p3126_p0 = scmp.lt.s32.totalorder %s4052_s30, %s3124_s12 }
  0xda   : > { %2918 = vmatmul.mubr.msk.f32.gmra.mrb[2].mxu0 %vm1369_vm14, %v1361_v5  ;;  %p3127_p1 = scmp.lt.s32.totalorder %s3125_s13, %s3119_s9 }
  0xdb   : > { %1712 = vrot.lane.b32.xlu0 %v3571_v41, %s3184_s10 }
  0xdc   : > { %p3128_p2 = por %p3127_p1, %p3126_p0 }
  0xde   : > { %p3129_p3 = pnand %p3128_p2, %p3122_p13 }
  0xe0   : > { %v1305_v10 = vpop.permute.xlu1 %1304 }
  0xe1   : > { %v1355_v15 = vsel %vm927_vm0, %v3684_v11, %v1305_v10 }
  0xe4   : > { %v1337_v14 = vpop.permute.xlu1 %1336 }
  0xe5   : > { %v1363_v18 = vsel %vm1251_vm11, %v1355_v15, %v1337_v14 }
  0xee   : > { %v1303_v12 = vpop.permute.xlu0 %1302 }
  0xef   : > { %v1354_v16 = vsel %vm927_vm0, %v3686_v13, %v1303_v12 }
  0xf2   : > { %v1335_v20 = vpop.permute.xlu0 %1334 }
  0xf3   : > { %v1362_v21 = vsel %vm1251_vm11, %v1354_v16, %v1335_v20 }
  0xf4   : > { %2920 = vmatprep.mubr.msk.f32.mxu0 %vm1369_vm14, %v1362_v21 }
  0xf5   : > { %2921 = vmatmul.mubr.msk.f32.gmra.mrb[4].mxu0 %vm1369_vm14, %v1363_v18 }
  0xfb   : > { %v1309_v22 = vpop.permute.xlu1 %1308 }
  0xfc   : > { %v1357_v32 = vsel %vm927_vm0, %v3696_v28, %v1309_v22 }
  0xff   : > { %v1341_v23 = vpop.permute.xlu1 %1340 }
 0x100   : > { %v1365_v36 = vsel %vm1251_vm11, %v1357_v32, %v1341_v23 }
 0x103   : > { %v1190_v24 = vpop.permute.xlu1 %1189 }
 0x104   : > { %v1244_v43 = vsel %vm927_vm0, %v3607_v56, %v1190_v24 }
 0x107   : > { %v1222_v25 = vpop.permute.xlu1 %1221 }
 0x108   : > { %v1253_v47 = vsel %vm1251_vm11, %v1244_v43, %v1222_v25 }
 0x109   : > { %v1307_v29 = vpop.permute.xlu0 %1306 }
 0x10a   : > { %v1356_v34 = vsel %vm927_vm0, %v3698_v30, %v1307_v29 }
 0x10b   : > { %v1194_v33 = vpop.permute.xlu1 %1193 }
 0x10c   : > { %v1246_v53 = vsel %vm927_vm0, %v3670_v40, %v1194_v33  ;;  %v1643_v33 = vld [vmem:[#allocation2 + $0x90] sm:$0xff] }
 0x10d   : > { %v1339_v37 = vpop.permute.xlu0 %1338 }
 0x10e   : > { %v1364_v35 = vsel %vm1251_vm11, %v1356_v34, %v1339_v37 }
 0x10f   : > { %2923 = vmatprep.mubr.msk.f32.mxu0 %vm1369_vm14, %v1364_v35  ;;  %v1226_v39 = vpop.permute.xlu1 %1225 }
 0x110   : > { %2924 = vmatmul.mubr.msk.f32.gmra.mrb[6].mxu0 %vm1369_vm14, %v1365_v36  ;;  %v1255_v57 = vsel %vm1251_vm11, %v1246_v53, %v1226_v39 }
 0x111   : > { %v1188_v41 = vpop.permute.xlu0 %1187 }
 0x112   : > { %v1243_v45 = vsel %vm927_vm0, %v1155_v42, %v1188_v41  ;;  %v1958_v41 = vld [vmem:[#allocation3 + $0x2] sm:$0xff]  ;;  %v2808_v42 = vld [vmem:[%s4100_s2] ss:$0 sm:$0xff] }
 0x113   : > { %v1198_v44 = vpop.permute.xlu1 %1197 }
 0x114   : > { %v1248_v38 = vsel %vm927_vm0, %v3686_v13, %v1198_v44 }
 0x115   : > { %v1220_v46 = vpop.permute.xlu0 %1219 }
 0x116   : > { %v1252_v48 = vsel %vm1251_vm11, %v1243_v45, %v1220_v46 }
 0x117   : > { %2930 = vmatprep.mubr.msk.f32.mxu0 %vm1369_vm14, %v1252_v48  ;;  %v1230_v50 = vpop.permute.xlu1 %1229 }
 0x118   : > { %2931 = vmatmul.mubr.msk.f32.vlgmr.msra.gmra.mrb[0].mxu0 %vm1369_vm14, %v1253_v47  ;;  %v1257_v2 = vsel %vm1251_vm11, %v1248_v38, %v1230_v50  ;;  %v2810_v50 = vld [vmem:[%s4101_s3 + $0x20] sm:$0xff] }
 0x119   : > { %v1192_v51 = vpop.permute.xlu0 %1191  ;;  %3029 = vmatpush3.bf16.msk.msra.mxu0 %vm3562_vm13, %v3637_v4 }
 0x11a   : > { %v1245_v55 = vsel %vm927_vm0, %v3625_v62, %v1192_v51  ;;  %v3030_v51 = vpack.c.bf16 %v2810_v50, %v2809_v0 }
 0x11b   : > { %v1202_v54 = vpop.permute.xlu1 %1201 }
 0x11c   : > { %v1250_v19 = vsel %vm927_vm0, %v3698_v30, %v1202_v54  ;;  %3031 = vmatprep.subr.bf16.mxu1 %v3030_v51 }
 0x11d   : > { %v1224_v56 = vpop.permute.xlu0 %1223  ;;  %3033 = vmatpush3.bf16.msra.mxu1 %v3030_v51 }
 0x11e   : > { %v1254_v58 = vsel %vm1251_vm11, %v1245_v55, %v1224_v56 }
 0x11f   : > { %2933 = vmatprep.mubr.msk.f32.mxu0 %vm1369_vm14, %v1254_v58  ;;  %v1234_v59 = vpop.permute.xlu1 %1233  ;;  %v2811_v58 = vld [vmem:[%s4101_s3 + $0x28] sm:$0xff] }
 0x120   : > { %2934 = vmatmul.mubr.msk.f32.gmra.mrb[2].mxu0 %vm1369_vm14, %v1255_v57  ;;  %v1259_v7 = vsel %vm1251_vm11, %v1250_v19, %v1234_v59  ;;  %2962 = vmatprep.subr.mxu1 %v2811_v58 }
 0x121   : > { %v1196_v61 = vpop.permute.xlu0 %1195  ;;  %2963 = vmatpush3.msra.mxu1 %v2811_v58 }
 0x122   : > { %v1247_v1 = vsel %vm927_vm0, %v3668_v26, %v1196_v61 }
 0x123   : > { %v1671_v63 = vpop.permute.xlu1 %1670 }
 0x124   : > { %v1725_v9 = vsel %vm927_vm0, %v3670_v40, %v1671_v63 }
 0x125   : > { %v1228_v49 = vpop.permute.xlu0 %1227 }
 0x126   : > { %v1256_v3 = vsel %vm1251_vm11, %v1247_v1, %v1228_v49 }
 0x127   : > { %2936 = vmatprep.mubr.msk.f32.mxu0 %vm1369_vm14, %v1256_v3  ;;  %v1703_v4 = vpop.permute.xlu1 %1702 }
 0x128   : > { %2937 = vmatmul.mubr.msk.f32.gmra.mrb[4].mxu0 %vm1369_vm14, %v1257_v2  ;;  %v1733_v12 = vsel %vm1251_vm11, %v1725_v9, %v1703_v4 }
 0x129   : > { %v1200_v60 = vpop.permute.xlu0 %1199 }
 0x12a   : > { %v1249_v27 = vsel %vm927_vm0, %v3684_v11, %v1200_v60 }
 0x12b   : > { %v1675_v31 = vpop.permute.xlu1 %1674 }
 0x12c   : > { %v1727_v18 = vsel %vm927_vm0, %v3686_v13, %v1675_v31 }
 0x12d   : > { %v1232_v6 = vpop.permute.xlu0 %1231 }
 0x12e   : > { %v1258_v8 = vsel %vm1251_vm11, %v1249_v27, %v1232_v6 }
 0x12f   : > { %2939 = vmatprep.mubr.msk.f32.mxu0 %vm1369_vm14, %v1258_v8  ;;  %v1707_v5 = vpop.permute.xlu1 %1706 }
 0x130   : > { %2940 = vmatmul.mubr.msk.f32.gmra.mrb[6].mxu0 %vm1369_vm14, %v1259_v7 }
 0x131   : > { %v1669_v52 = vpop.permute.xlu0 %1668 }
 0x132   : > { %v1724_v17 = vsel %vm927_vm0, %v3625_v62, %v1669_v52  ;;  %v1735_v62 = vsel %vm1251_vm11, %v1727_v18, %v1707_v5 }
 0x133   : > { %v1679_v15 = vpop.permute.xlu1 %1678 }
 0x134   : > { %v1729_v24 = vsel %vm927_vm0, %v3698_v30, %v1679_v15  ;;  %v2047_v15 = vld [vmem:[%s4101_s3] sm:$0xff] }
 0x135   : > { %v1701_v10 = vpop.permute.xlu0 %1700 }
 0x136   : > { %v1732_v14 = vsel %vm1251_vm11, %v1724_v17, %v1701_v10 }
 0x137   : > { %2946 = vmatprep.mubr.msk.f32.mxu0 %vm1369_vm14, %v1732_v14  ;;  %v1711_v22 = vpop.permute.xlu1 %1710 }
 0x138   : > { %2947 = vmatmul.mubr.msk.f32.vlgmr.msra.gmra.mrb[0].mxu0 %vm1369_vm14, %v1733_v12 }
 0x139   : > { %v1673_v16 = vpop.permute.xlu0 %1672 }
 0x13a   : > { %v1726_v40 = vsel %vm927_vm0, %v3668_v26, %v1673_v16  ;;  %v1737_v26 = vsel %vm1251_vm11, %v1729_v24, %v1711_v22  ;;  %v2048_v16 = vld [vmem:[%s4101_s3 + $0x8] sm:$0xff]  ;;  %v2433_v24 = vld [vmem:[#allocation3 + $0x91] sm:$0xff] }
 0x13b   : > { %v1683_v25 = vpop.permute.xlu1 %1682  ;;  %v3034_v18 = vpack.c.bf16 %v2048_v16, %v2047_v15 }
 0x13c   : > { %v1731_v36 = vsel %vm927_vm0, %v1643_v33, %v1683_v25 }
 0x13d   : > { %v1705_v20 = vpop.permute.xlu0 %1704  ;;  %3035 = vmatprep.subr.bf16.mxu1 %v3034_v18 }
 0x13e   : > { %v1734_v21 = vsel %vm1251_vm11, %v1726_v40, %v1705_v20 }
 0x13f   : > { %2949 = vmatprep.mubr.msk.f32.mxu0 %vm1369_vm14, %v1734_v21  ;;  %v1715_v37 = vpop.permute.xlu1 %1714 }
 0x140   : > { %2950 = vmatmul.mubr.msk.f32.gmra.mrb[2].mxu0 %vm1369_vm14, %v1735_v62 }
 0x141   : > { %v1677_v23 = vpop.permute.xlu0 %1676 }
 0x142   : > { %v1728_v13 = vsel %vm927_vm0, %v3684_v11, %v1677_v23  ;;  %v1739_v11 = vsel %vm1251_vm11, %v1731_v36, %v1715_v37 }
 0x145   : > { %v1709_v29 = vpop.permute.xlu0 %1708 }
 0x146   : > { %v1736_v32 = vsel %vm1251_vm11, %v1728_v13, %v1709_v29  ;;  %v2441_v13 = vld [vmem:[#allocation3 + $0x92] sm:$0xff] }
 0x147   : > { %2952 = vmatprep.mubr.msk.f32.mxu0 %vm1369_vm14, %v1736_v32 }
 0x148   : > { %2953 = vmatmul.mubr.msk.f32.gmra.mrb[4].mxu0 %vm1369_vm14, %v1737_v26 }
 0x149   : > { %v1681_v34 = vpop.permute.xlu0 %1680 }
 0x14a   : > { %v1730_v30 = vsel %vm927_vm0, %v3696_v28, %v1681_v34  ;;  %v1950_v28 = vld [vmem:[#allocation3 + $0x1] sm:$0xff]  ;;  %vm2158_vm0 = vcmask 195584  }
 0x14b   : > { %1974 = vrot.lane.b32.xlu0 %v1950_v28, %s3184_s10 }
 0x14d   : > { %v1713_v35 = vpop.permute.xlu0 %1712 }
 0x14e   : > { %v1738_v39 = vsel %vm1251_vm11, %v1730_v30, %v1713_v35 }
 0x14f   : > { %2955 = vmatprep.mubr.msk.f32.mxu0 %vm1369_vm14, %v1738_v39  ;;  %2006 = vrot.lane.b32.xlu0 %v1958_v41, %s3187_s8 }
 0x150   : > { %2956 = vmatmul.mubr.msk.f32.gmra.mrb[6].mxu0 %vm1369_vm14, %v1739_v11 }
 0x1bd   : > { %v3894_v25 = vpop.permute.xlu0 %1974 }
 0x1c1   : > { %v3896_v29 = vpop.permute.xlu0 %2006 }
 0x20b   : > { %v2948_v43 = vpop.f32.mrb[0].mxu0 }
 0x20c   : > { %v1891_v44 = vadd.f32 %v2948_v43, %v2808_v42  ;;  %v1836_v45 = vpop.f32.mrb[1].mxu0 }
 0x20d   : > { %v1890_v46 = vadd.f32 %v2808_v42, %v1836_v45  ;;  %v2828_v45 = vld [vmem:[%s4101_s3 + $0x30] sm:$0xff] }
 0x20e   : > { %v1899_v47 = vmax.f32 %v1891_v44, 0.0  ;;  %v2049_v44 = vld [vmem:[%s4101_s3 + $0x10] sm:$0xff] }
 0x20f   : > { %v1898_v48 = vmax.f32 %v1890_v46, 0.0  ;;  %v2829_v46 = vld [vmem:[%s4101_s3 + $0x38] sm:$0xff] }
 0x210   : > { %1935 = vst.msk [vmem:[#allocation3 + $0x21] sm:$0xff] %vm1251_vm11, %v1899_v47  ;;  %v3038_v0 = vpack.c.bf16 %v2829_v46, %v2828_v45 }
 0x211   : > { %1934 = vst.msk [vmem:[#allocation3 + $0x11] sm:$0xff] %vm1251_vm11, %v1898_v48 }
 0x213   : > { %v2951_v53 = vpop.f32.mrb[2].mxu0 }
 0x214   : > { %v1893_v54 = vadd.f32 %v2951_v53, %v2808_v42  ;;  %v1846_v55 = vpop.f32.mrb[3].mxu0 }
 0x215   : > { %v1892_v56 = vadd.f32 %v2808_v42, %v1846_v55 }
 0x216   : > { %v1901_v57 = vmax.f32 %v1893_v54, 0.0 }
 0x217   : > { %v1900_v59 = vmax.f32 %v1892_v56, 0.0  ;;  %v3831_v61 = vld [vmem:[#allocation3 + $0x21] sm:$0xff] }
 0x218   : > { %1937 = vst.msk [vmem:[#allocation3 + $0x41] sm:$0xff] %vm1251_vm11, %v1901_v57  ;;  %2084 = vrot.lane.b32.xlu1 %v3831_v61, %s3184_s10  ;;  %1978 = vrot.lane.b32.xlu0 %v3831_v61, %s3184_s10  ;;  %v2067_v63 = vld [vmem:[#allocation3 + $0x22] sm:$0xff]  ;;  %v2058_v60 = vld [vmem:[#allocation3 + $0x11] sm:$0xff] }
 0x219   : > { %1936 = vst.msk [vmem:[#allocation3 + $0x31] sm:$0xff] %vm1251_vm11, %v1900_v59  ;;  %v2066_v31 = vld [vmem:[#allocation3 + $0x12] sm:$0xff]  ;;  %v3906_v35 = vld [vmem:[#allocation3 + $0x20] sm:$0xff] }
 0x21a   : > { %v3904_v30 = vld [vmem:[#allocation3 + $0x10] sm:$0xff] }
 0x21b   : > { %v2954_v38 = vpop.f32.mrb[4].mxu0 }
 0x21c   : > { %v1895_v1 = vadd.f32 %v2954_v38, %v2808_v42  ;;  %2116 = vrot.lane.b32.xlu1 %v2067_v63, %s3187_s8  ;;  %2010 = vrot.lane.b32.xlu0 %v2067_v63, %s3187_s8  ;;  %v1856_v49 = vpop.f32.mrb[5].mxu0 }
 0x21d   : > { %v1894_v2 = vadd.f32 %v2808_v42, %v1856_v49 }
 0x21e   : > { %v1903_v3 = vmax.f32 %v1895_v1, 0.0 }
 0x21f   : > { %v1902_v4 = vmax.f32 %v1894_v2, 0.0  ;;  %v2061_v5 = vld [vmem:[#allocation3 + $0x41] sm:$0xff] }
 0x220   : > { %1939 = vst.msk [vmem:[#allocation3 + $0x61] sm:$0xff] %vm1251_vm11, %v1903_v3  ;;  %2082 = vrot.lane.b32.xlu0 %v2058_v60, %s3184_s10  ;;  %1976 = vrot.lane.b32.xlu1 %v2058_v60, %s3184_s10  ;;  %v2069_v9 = vld [vmem:[#allocation3 + $0x42] sm:$0xff]  ;;  %v2060_v17 = vld [vmem:[#allocation3 + $0x31] sm:$0xff] }
 0x221   : > { %1938 = vst.msk [vmem:[#allocation3 + $0x51] sm:$0xff] %vm1251_vm11, %v1902_v4  ;;  %v2068_v10 = vld [vmem:[#allocation3 + $0x32] sm:$0xff]  ;;  %v3933_v56 = vld [vmem:[#allocation3 + $0x40] sm:$0xff] }
 0x222   : > { %v3931_v55 = vld [vmem:[#allocation3 + $0x30] sm:$0xff] }
 0x223   : > { %v2957_v19 = vpop.f32.mrb[6].mxu0 }
 0x224   : > { %v1897_v27 = vadd.f32 %v2957_v19, %v2808_v42  ;;  %2114 = vrot.lane.b32.xlu0 %v2066_v31, %s3187_s8  ;;  %2008 = vrot.lane.b32.xlu1 %v2066_v31, %s3187_s8  ;;  %v1866_v6 = vpop.f32.mrb[7].mxu0 }
 0x225   : > { %v1896_v7 = vadd.f32 %v2808_v42, %v1866_v6 }
 0x226   : > { %v1905_v8 = vmax.f32 %v1897_v27, 0.0 }
 0x227   : > { %v1904_v52 = vmax.f32 %v1896_v7, 0.0  ;;  %v2063_v12 = vld [vmem:[#allocation3 + $0x61] sm:$0xff] }
 0x228   : > { %1941 = vst.msk [vmem:[#allocation3 + $0x81] sm:$0xff] %vm1251_vm11, %v1905_v8  ;;  %2088 = vrot.lane.b32.xlu1 %v2061_v5, %s3184_s10  ;;  %1982 = vrot.lane.b32.xlu0 %v2061_v5, %s3184_s10  ;;  %v2071_v14 = vld [vmem:[#allocation3 + $0x62] sm:$0xff]  ;;  %v2062_v40 = vld [vmem:[#allocation3 + $0x51] sm:$0xff] }
 0x229   : > { %1940 = vst.msk [vmem:[#allocation3 + $0x71] sm:$0xff] %vm1251_vm11, %v1904_v52  ;;  %v2070_v20 = vld [vmem:[#allocation3 + $0x52] sm:$0xff]  ;;  %v3945_v31 = vld [vmem:[#allocation3 + $0x60] sm:$0xff] }
 0x22a   : > { %v3943_v19 = vld [vmem:[#allocation3 + $0x50] sm:$0xff] }
 0x22c   : > { %2120 = vrot.lane.b32.xlu1 %v2069_v9, %s3187_s8  ;;  %2014 = vrot.lane.b32.xlu0 %v2069_v9, %s3187_s8 }
 0x22f   : > { %v2065_v62 = vld [vmem:[#allocation3 + $0x81] sm:$0xff] }
 0x230   : > { %2086 = vrot.lane.b32.xlu0 %v2060_v17, %s3184_s10  ;;  %1980 = vrot.lane.b32.xlu1 %v2060_v17, %s3184_s10  ;;  %v2064_v21 = vld [vmem:[#allocation3 + $0x71] sm:$0xff]  ;;  %v2073_v22 = vld [vmem:[#allocation3 + $0x82] sm:$0xff] }
 0x231   : > { %v2072_v23 = vld [vmem:[#allocation3 + $0x72] sm:$0xff] }
 0x234   : > { %2118 = vrot.lane.b32.xlu0 %v2068_v10, %s3187_s8  ;;  %2012 = vrot.lane.b32.xlu1 %v2068_v10, %s3187_s8 }
 0x238   : > { %2092 = vrot.lane.b32.xlu1 %v2063_v12, %s3184_s10  ;;  %1986 = vrot.lane.b32.xlu0 %v2063_v12, %s3184_s10 }
 0x23c   : > { %2124 = vrot.lane.b32.xlu1 %v2071_v14, %s3187_s8  ;;  %2018 = vrot.lane.b32.xlu0 %v2071_v14, %s3187_s8 }
 0x240   : > { %2090 = vrot.lane.b32.xlu0 %v2062_v40, %s3184_s10  ;;  %1984 = vrot.lane.b32.xlu1 %v2062_v40, %s3184_s10 }
 0x244   : > { %2122 = vrot.lane.b32.xlu0 %v2070_v20, %s3187_s8  ;;  %2016 = vrot.lane.b32.xlu1 %v2070_v20, %s3187_s8 }
 0x248   : > { %2096 = vrot.lane.b32.xlu1 %v2065_v62, %s3184_s10  ;;  %2094 = vrot.lane.b32.xlu0 %v2064_v21, %s3184_s10 }
 0x24c   : > { %2128 = vrot.lane.b32.xlu1 %v2073_v22, %s3187_s8  ;;  %2126 = vrot.lane.b32.xlu0 %v2072_v23, %s3187_s8 }
 0x250   : > { %2452 = vrot.lane.b32.xlu1 %v2060_v17, %s3184_s10  ;;  %2450 = vrot.lane.b32.xlu0 %v3831_v61, %s3184_s10 }
 0x254   : > { %2484 = vrot.lane.b32.xlu1 %v2068_v10, %s3187_s8  ;;  %2482 = vrot.lane.b32.xlu0 %v2067_v63, %s3187_s8  ;;  %v1942_v10 = vld [vmem:[#allocation3] sm:$0xff] }
 0x255   : > { %v2030_v15 = vsel %vm1251_vm11, %v1942_v10, %v3894_v25 }
 0x258   : > { %2456 = vrot.lane.b32.xlu1 %v2062_v40, %s3184_s10  ;;  %2454 = vrot.lane.b32.xlu0 %v2061_v5, %s3184_s10 }
 0x25c   : > { %2488 = vrot.lane.b32.xlu1 %v2070_v20, %s3187_s8  ;;  %2486 = vrot.lane.b32.xlu0 %v2069_v9, %s3187_s8 }
 0x260   : > { %2458 = vrot.lane.b32.xlu0 %v2063_v12, %s3184_s10  ;;  %1988 = vrot.lane.b32.xlu1 %v2064_v21, %s3184_s10  ;;  %v3955_v12 = vld [vmem:[#allocation3 + $0x80] sm:$0xff] }
 0x264   : > { %2490 = vrot.lane.b32.xlu0 %v2071_v14, %s3187_s8  ;;  %2020 = vrot.lane.b32.xlu1 %v2072_v23, %s3187_s8  ;;  %v3957_v14 = vld [vmem:[#allocation3 + $0x70] sm:$0xff] }
 0x268   : > { %2462 = vrot.lane.b32.xlu0 %v2065_v62, %s3184_s10  ;;  %2464 = vrot.lane.b32.xlu1 %v2433_v24, %s3184_s10 }
 0x26c   : > { %2494 = vrot.lane.b32.xlu0 %v2073_v22, %s3187_s8  ;;  %2460 = vrot.lane.b32.xlu1 %v2064_v21, %s3184_s10  ;;  %v2039_v22 = vsel %vm2038_vm2, %v2030_v15, %v3896_v29  ;;  %v2830_v29 = vld [vmem:[%s4101_s3 + $0x40] sm:$0xff] }
 0x270   : > { %2492 = vrot.lane.b32.xlu1 %v2072_v23, %s3187_s8 }
 0x274   : > { %2496 = vrot.lane.b32.xlu1 %v2441_v13, %s3187_s8  ;;  %s4050_s8 = scalar_lea.hbm %s4103_s5, %s2846_s26 }
 0x28a   : > { %v2085_v26 = vpop.permute.xlu1 %2084  ;;  %v3898_v32 = vpop.permute.xlu0 %1978 }
 0x28b   : > { %v2139_v41 = vsel %vm1251_vm11, %v3906_v35, %v2085_v26  ;;  %v2032_v25 = vsel %vm1251_vm11, %v3906_v35, %v3898_v32 }
 0x28e   : > { %v2117_v33 = vpop.permute.xlu1 %2116  ;;  %v3900_v34 = vpop.permute.xlu0 %2010 }
 0x28f   : > { %v2147_v43 = vsel %vm2038_vm2, %v2139_v41, %v2117_v33  ;;  %v2041_v33 = vsel %vm2038_vm2, %v2032_v25, %v3900_v34 }
 0x292   : > { %v2083_v36 = vpop.permute.xlu0 %2082  ;;  %v3902_v37 = vpop.permute.xlu1 %1976 }
 0x293   : > { %v2138_v11 = vsel %vm1251_vm11, %v3904_v30, %v2083_v36  ;;  %v2031_v13 = vsel %vm1251_vm11, %v3904_v30, %v3902_v37 }
 0x296   : > { %v2115_v39 = vpop.permute.xlu0 %2114  ;;  %v3910_v28 = vpop.permute.xlu1 %2008 }
 0x297   : > { %v2146_v42 = vsel %vm2038_vm2, %v2138_v11, %v2115_v39  ;;  %v2040_v26 = vsel %vm2038_vm2, %v2031_v13, %v3910_v28 }
 0x298   : > { %2964 = vmatprep.mubr.msk.f32.mxu1 %vm2158_vm0, %v2146_v42 }
 0x299   : > { %2965 = vmatmul.mubr.msk.f32.vlgmr.msra.gmra.mrb[0].mxu1 %vm2158_vm0, %v2147_v43 }
 0x29a   : > { %v2089_v47 = vpop.permute.xlu1 %2088  ;;  %v3927_v48 = vpop.permute.xlu0 %1982  ;;  %3037 = vmatpush3.bf16.msra.mxu1 %v3034_v18 }
 0x29b   : > { %2980 = vmatprep.subr.mxu1 %v2049_v44  ;;  %v2141_v61 = vsel %vm1251_vm11, %v3933_v56, %v2089_v47  ;;  %v2034_v37 = vsel %vm1251_vm11, %v3933_v56, %v3927_v48 }
 0x29e   : > { %v2121_v50 = vpop.permute.xlu1 %2120  ;;  %v3929_v51 = vpop.permute.xlu0 %2014  ;;  %2981 = vmatpush3.msra.mxu1 %v2049_v44 }
 0x29f   : > { %3039 = vmatprep.subr.bf16.mxu1 %v3038_v0  ;;  %v2149_v63 = vsel %vm2038_vm2, %v2141_v61, %v2121_v50  ;;  %v2043_v34 = vsel %vm2038_vm2, %v2034_v37, %v3929_v51 }
 0x2a2   : > { %v2087_v53 = vpop.permute.xlu0 %2086  ;;  %v1981_v54 = vpop.permute.xlu1 %1980 }
 0x2a3   : > { %v2140_v57 = vsel %vm1251_vm11, %v3931_v55, %v2087_v53  ;;  %v2033_v32 = vsel %vm1251_vm11, %v3931_v55, %v1981_v54 }
 0x2a6   : > { %v2119_v58 = vpop.permute.xlu0 %2118  ;;  %v2013_v59 = vpop.permute.xlu1 %2012 }
 0x2a7   : > { %v2148_v38 = vsel %vm2038_vm2, %v2140_v57, %v2119_v58  ;;  %v2042_v30 = vsel %vm2038_vm2, %v2033_v32, %v2013_v59 }
 0x2a8   : > { %2967 = vmatprep.mubr.msk.f32.mxu1 %vm2158_vm0, %v2148_v38 }
 0x2a9   : > { %2968 = vmatmul.mubr.msk.f32.gmra.mrb[2].mxu1 %vm2158_vm0, %v2149_v63 }
 0x2aa   : > { %v2093_v1 = vpop.permute.xlu1 %2092  ;;  %v1987_v49 = vpop.permute.xlu0 %1986 }
 0x2ab   : > { %v2143_v8 = vsel %vm1251_vm11, %v3945_v31, %v2093_v1  ;;  %v2036_v42 = vsel %vm1251_vm11, %v3945_v31, %v1987_v49 }
 0x2ae   : > { %v2125_v2 = vpop.permute.xlu1 %2124  ;;  %v2019_v3 = vpop.permute.xlu0 %2018 }
 0x2af   : > { %v2151_v5 = vsel %vm2038_vm2, %v2143_v8, %v2125_v2  ;;  %v2045_v44 = vsel %vm2038_vm2, %v2036_v42, %v2019_v3 }
 0x2b2   : > { %v2091_v4 = vpop.permute.xlu0 %2090  ;;  %v1985_v60 = vpop.permute.xlu1 %1984 }
 0x2b3   : > { %v2142_v27 = vsel %vm1251_vm11, %v3943_v19, %v2091_v4  ;;  %v2035_v41 = vsel %vm1251_vm11, %v3943_v19, %v1985_v60 }
 0x2b6   : > { %v2123_v6 = vpop.permute.xlu0 %2122  ;;  %v2017_v7 = vpop.permute.xlu1 %2016 }
 0x2b7   : > { %v2150_v52 = vsel %vm2038_vm2, %v2142_v27, %v2123_v6  ;;  %v2044_v43 = vsel %vm2038_vm2, %v2035_v41, %v2017_v7  ;;  %v2425_v27 = vld [vmem:[#allocation3 + $0x90] sm:$0xff] }
 0x2b8   : > { %2970 = vmatprep.mubr.msk.f32.mxu1 %vm2158_vm0, %v2150_v52 }
 0x2b9   : > { %2971 = vmatmul.mubr.msk.f32.gmra.mrb[4].mxu1 %vm2158_vm0, %v2151_v5  ;;  %v2839_v5 = vld [vmem:[%s4102_s4] ss:$0 sm:$0xff] }
 0x2ba   : > { %v2097_v9 = vpop.permute.xlu1 %2096  ;;  %v2095_v17 = vpop.permute.xlu0 %2094 }
 0x2bb   : > { %v2145_v16 = vsel %vm1251_vm11, %v3955_v12, %v2097_v9  ;;  %v2144_v18 = vsel %vm1251_vm11, %v3957_v14, %v2095_v17 }
 0x2be   : > { %v2129_v40 = vpop.permute.xlu1 %2128  ;;  %v2127_v20 = vpop.permute.xlu0 %2126 }
 0x2bf   : > { %v2153_v62 = vsel %vm2038_vm2, %v2145_v16, %v2129_v40  ;;  %v2152_v21 = vsel %vm2038_vm2, %v2144_v18, %v2127_v20 }
 0x2c0   : > { %2973 = vmatprep.mubr.msk.f32.mxu1 %vm2158_vm0, %v2152_v21 }
 0x2c1   : > { %2974 = vmatmul.mubr.msk.f32.gmra.mrb[6].mxu1 %vm2158_vm0, %v2153_v62 }
 0x2c2   : > { %v2453_v23 = vpop.permute.xlu1 %2452  ;;  %v2451_v24 = vpop.permute.xlu0 %2450  ;;  %2982 = vmatprep.mubr.msk.f32.mxu1 %vm2158_vm0, %v2039_v22 }
 0x2c3   : > { %v2506_v53 = vsel %vm1251_vm11, %v3906_v35, %v2451_v24  ;;  %v2507_v58 = vsel %vm1251_vm11, %v3931_v55, %v2453_v23 }
 0x2c5   : > { %2983 = vmatmul.mubr.msk.f32.vlgmr.msra.gmra.mrb[0].mxu1 %vm2158_vm0, %v2040_v26 }
 0x2c6   : > { %v2485_v36 = vpop.permute.xlu1 %2484  ;;  %v2483_v11 = vpop.permute.xlu0 %2482  ;;  %2985 = vmatprep.mubr.msk.f32.mxu1 %vm2158_vm0, %v2041_v33  ;;  %3041 = vmatpush3.bf16.msra.mxu1 %v3038_v0 }
 0x2c7   : > { %2998 = vmatprep.subr.mxu1 %v2830_v29  ;;  %v2514_v57 = vsel %vm2038_vm2, %v2506_v53, %v2483_v11  ;;  %v2515_v61 = vsel %vm2038_vm2, %v2507_v58, %v2485_v36 }
 0x2c9   : > { %2986 = vmatmul.mubr.msk.f32.gmra.mrb[2].mxu1 %vm2158_vm0, %v2042_v30 }
 0x2ca   : > { %v2457_v39 = vpop.permute.xlu1 %2456  ;;  %v2455_v28 = vpop.permute.xlu0 %2454  ;;  %2988 = vmatprep.mubr.msk.f32.mxu1 %vm2158_vm0, %v2043_v34  ;;  %2999 = vmatpush3.msra.mxu1 %v2830_v29 }
 0x2cb   : > { %v2508_v38 = vsel %vm1251_vm11, %v3933_v56, %v2455_v28  ;;  %v2509_v1 = vsel %vm1251_vm11, %v3943_v19, %v2457_v39 }
 0x2cd   : > { %2989 = vmatmul.mubr.msk.f32.gmra.mrb[4].mxu1 %vm2158_vm0, %v2044_v43 }
 0x2ce   : > { %v2489_v45 = vpop.permute.xlu1 %2488  ;;  %v2487_v46 = vpop.permute.xlu0 %2486  ;;  %2991 = vmatprep.mubr.msk.f32.mxu1 %vm2158_vm0, %v2045_v44 }
 0x2cf   : > { %v2516_v35 = vsel %vm2038_vm2, %v2508_v38, %v2487_v46  ;;  %v2517_v2 = vsel %vm2038_vm2, %v2509_v1, %v2489_v45 }
 0x2d2   : > { %v2459_v47 = vpop.permute.xlu0 %2458  ;;  %v1989_v48 = vpop.permute.xlu1 %1988 }
 0x2d3   : > { %v2037_v0 = vsel %vm1251_vm11, %v3957_v14, %v1989_v48  ;;  %v2510_v55 = vsel %vm1251_vm11, %v3945_v31, %v2459_v47 }
 0x2d6   : > { %v2491_v50 = vpop.permute.xlu0 %2490  ;;  %v2021_v51 = vpop.permute.xlu1 %2020 }
 0x2d7   : > { %v2046_v54 = vsel %vm2038_vm2, %v2037_v0, %v2021_v51  ;;  %v2518_v3 = vsel %vm2038_vm2, %v2510_v55, %v2491_v50 }
 0x2d8   : > { %2992 = vmatmul.mubr.msk.f32.gmra.mrb[6].mxu1 %vm2158_vm0, %v2046_v54 }
 0x2d9   : > { %3000 = vmatprep.mubr.msk.f32.mxu1 %vm2158_vm0, %v2514_v57 }
 0x2da   : > { %v2465_v59 = vpop.permute.xlu1 %2464  ;;  %v2463_v63 = vpop.permute.xlu0 %2462 }
 0x2db   : > { %v2512_v19 = vsel %vm1251_vm11, %v3955_v12, %v2463_v63  ;;  %v2513_v7 = vsel %vm1251_vm11, %v2425_v27, %v2465_v59 }
 0x2dc   : > { %3001 = vmatmul.mubr.msk.f32.vlgmr.msra.gmra.mrb[0].mxu1 %vm2158_vm0, %v2515_v61 }
 0x2dd   : > { %3003 = vmatprep.mubr.msk.f32.mxu1 %vm2158_vm0, %v2516_v35 }
 0x2de   : > { %v2461_v49 = vpop.permute.xlu1 %2460  ;;  %v2495_v56 = vpop.permute.xlu0 %2494 }
 0x2df   : > { %v2511_v4 = vsel %vm1251_vm11, %v3957_v14, %v2461_v49  ;;  %v2520_v31 = vsel %vm2038_vm2, %v2512_v19, %v2495_v56 }
 0x2e0   : > { %3004 = vmatmul.mubr.msk.f32.gmra.mrb[2].mxu1 %vm2158_vm0, %v2517_v2 }
 0x2e1   : > { %3006 = vmatprep.mubr.msk.f32.mxu1 %vm2158_vm0, %v2518_v3 }
 0x2e2   : > { %v2493_v60 = vpop.permute.xlu1 %2492 }
 0x2e3   : > { %v2519_v6 = vsel %vm2038_vm2, %v2511_v4, %v2493_v60 }
 0x2e4   : > { %3007 = vmatmul.mubr.msk.f32.gmra.mrb[4].mxu1 %vm2158_vm0, %v2519_v6 }
 0x2e5   : > { %3009 = vmatprep.mubr.msk.f32.mxu1 %vm2158_vm0, %v2520_v31 }
 0x2e6   : > { %v2497_v8 = vpop.permute.xlu1 %2496 }
 0x2e7   : > { %v2521_v52 = vsel %vm2038_vm2, %v2513_v7, %v2497_v8 }
 0x2e8   : > { %3010 = vmatmul.mubr.msk.f32.gmra.mrb[6].mxu1 %vm2158_vm0, %v2521_v52 }
 0x3af   : > { %v3002_v9 = vpop.f32.mrb[0].mxu1 }
 0x3b0   : > { %v2671_v17 = vadd.f32 %v3002_v9, %v2839_v5  ;;  %v2616_v10 = vpop.f32.mrb[1].mxu1 }
 0x3b1   : > { %v2670_v12 = vadd.f32 %v2839_v5, %v2616_v10 }
 0x3b2   : > { %v2679_v14 = vmax.f32 %v2671_v17, 0.0 }
 0x3b3   : > { %v2678_v15 = vmax.f32 %v2670_v12, 0.0  ;;  %v3005_v16 = vpop.f32.mrb[2].mxu1 }
 0x3b4   : > { %2687 = vst [vmem:[%s217_s25 + $0x8] sm:$0xff] %v2679_v14  ;;  %v2673_v18 = vadd.f32 %v3005_v16, %v2839_v5  ;;  %v2626_v40 = vpop.f32.mrb[3].mxu1 }
 0x3b5   : > { %2686 = vst [vmem:[%s217_s25] sm:$0xff] %v2678_v15  ;;  %v2672_v20 = vadd.f32 %v2839_v5, %v2626_v40 }
 0x3b6   : > { %v2681_v62 = vmax.f32 %v2673_v18, 0.0 }
 0x3b7   : > { %v2680_v21 = vmax.f32 %v2672_v20, 0.0  ;;  %v3008_v22 = vpop.f32.mrb[4].mxu1 }
 0x3b8   : > { %2689 = vst [vmem:[%s217_s25 + $0x18] sm:$0xff] %v2681_v62  ;;  %v2675_v23 = vadd.f32 %v3008_v22, %v2839_v5  ;;  %v2636_v24 = vpop.f32.mrb[5].mxu1 }
 0x3b9   : > { %2688 = vst [vmem:[%s217_s25 + $0x10] sm:$0xff] %v2680_v21  ;;  %v2674_v13 = vadd.f32 %v2839_v5, %v2636_v24 }
 0x3ba   : > { %v2683_v25 = vmax.f32 %v2675_v23, 0.0 }
 0x3bb   : > { %v2682_v26 = vmax.f32 %v2674_v13, 0.0  ;;  %v3011_v29 = vpop.f32.mrb[6].mxu1 }
 0x3bc   : > { %2691 = vst [vmem:[%s217_s25 + $0x28] sm:$0xff] %v2683_v25  ;;  %v2677_v33 = vadd.f32 %v3011_v29, %v2839_v5  ;;  %v2646_v36 = vpop.f32.mrb[7].mxu1 }
 0x3bd   : > { %2690 = vst [vmem:[%s217_s25 + $0x20] sm:$0xff] %v2682_v26  ;;  %v2676_v11 = vadd.f32 %v2839_v5, %v2646_v36 }
 0x3be   : > { %v2685_v32 = vmax.f32 %v2677_v33, 0.0 }
 0x3bf   : > { %v2684_v37 = vmax.f32 %v2676_v11, 0.0 }
 0x3c0   : > { %2693 = vst [vmem:[%s217_s25 + $0x38] sm:$0xff] %v2685_v32 }
 0x3c1   : > { %2692 = vst [vmem:[%s217_s25 + $0x30] sm:$0xff] %v2684_v37 }
 0x3c2   : > { %3132 = shalt.err (!%p3129_p3)
}
 0x3c3   : > { %s3133_s14 = scalar_lea.hbm %s4050_s8, 1024  ;;  %s3137_s17 = scalar_lea.hbm %s4103_s5, 2048 }
 0x3c4   : > { %p3134_p4 = scmp.ne.s32.totalorder %s4050_s8, %s3133_s14  ;;  %p3138_p9 = scmp.lt.u32.totalorder %s4050_s8, %s4103_s5 }
 0x3c5   : > { %p3139_p10 = scmp.lt.u32.totalorder %s3137_s17, %s3133_s14  ;;  %p3141_p12 = scmp.lt.u32.totalorder %s3133_s14, %s4050_s8 }
 0x3c6   : > { %p3135_p7 = pnand %p3134_p4, %p3258_p5 }
 0x3c7   : > { %p3140_p11 = por %p3139_p10, %p3138_p9 }
 0x3c8   : > { %p3136_p8 = pneg %p3135_p7 }
 0x3c9   : > { %p3142_p13 = por %p3141_p12, %p3140_p11 }
 0x3cb   : > { %p3143_p0 = pnand %p3142_p13, %p3136_p8 }
 0x3cd   : > { %3146 = shalt.err (!%p3143_p0)
}
 0x3ce   : > { %s3189_s26 = smov 128  }
 0x3cf   : > { %3074 = dma.vmem_to_hbm [thread:$0]  (%p3258_p5), %s4052_s30, 1024, %s4050_s8, %s4056_s22, %s3189_s26, %s3189_s26, %s3184_s10  }
 0x3d0 PF: > { %p3080_p1 = scmp.ge.s32.totalorder %s3181_s21, 2  ;;  %s2723_s6 = sand.u32 1, %s3169_s18  }
 0x3d1   : > { %s2724_s7 = scalar_lea.sflag [#allocation5], %s2723_s6 }
 0x3d2   : > { %p3077_p2 = pnand %p3080_p1, %p3262_p6 }
 0x3d4   : > { %3164 = dma.done.wait (!%p3077_p2), %s2724_s7, 1024  }
 0x3d5   : > { %3166 = vsyncadd (!%p3077_p2), %s2724_s7, 4294966272  ;;  %p15_p3 = scmp.ge.s32.totalorder %s3245_s24, 4   ;;  %s4108_s18 = smov %s3173_s19 }
 0x3d6   : > { %s4109_s19 = smov %s3177_s20  ;;  %s4110_s20 = smov %s3256_s27 }
 0x3d7   : > { %s4111_s21 = smov %s3245_s24  ;;  %17 = sbr.rel (!%p15_p3) target bundleno = 3 (0x3), region = 85 }
 0x3de   :  { %2729 = vsyncpa [#allocation5], 1 }
 0x3df   :  { %2731 = vsyncpa [#allocation5 + $0x1], 1 }

</bundles_post_ra>
